<compile_context>
chip_gen: v7x
topology: tpu7x:2x2x1
jax: 0.10.0
libtpu: 0.0.40
codegen_flags: <defaults>
</compile_context>

<pallas_src>
import functools
import math

import jax
import jax.numpy as jnp
from jax import lax
from jax.experimental import pallas as pl
from jax.experimental.pallas import tpu as pltpu


def _cdiv(a, b):
    return -(-a // b)


def _round_up(a, b):
    return _cdiv(a, b) * b


def _basic_conv_kernel(x_hbm, w_ref, scale_ref, bias_ref, o_ref,
                       x_vmem, col_ref, dma_sem, *,
                       kernel_size, stride, tile_h, out_w, cin_p):
    """One grid step = one (batch, row-tile, Cout-tile) output block.

    x_hbm:     (N, Hp, Wp, Cin_p)        full padded input, left in HBM (pl.ANY)
    w_ref:     (k*k*Cin_p, COUT_TILE)    im2col-layout weights (VMEM block)
    scale_ref: (1, COUT_TILE)            folded BN scale
    bias_ref:  (1, COUT_TILE)            folded BN bias
    o_ref:     (1, TILE_M, COUT_TILE)    output block, TILE_M = tile_h * out_w
    x_vmem:    (HALO_H, Wp, Cin_p)       scratch: input halo rows for this row tile
    col_ref:   (TILE_M, k*k*Cin_p)       scratch: im2col tile (contraction on lanes)
    """
    b = pl.program_id(0)
    ht = pl.program_id(1)
    ct = pl.program_id(2)

    k = kernel_size
    halo_h = (tile_h - 1) * stride + k
    tile_m = tile_h * out_w

    # The halo + im2col staging depend only on (b, ht); the Cout-tile axis is the innermost,
    # sequential ("arbitrary") axis, so only refresh them when it wraps back to 0.
    @pl.when(ct == 0)
    def _stage_inputs():
        h_start = pl.multiple_of(ht * (tile_h * stride), tile_h * stride)
        cp = pltpu.make_async_copy(x_hbm.at[b, pl.ds(h_start, halo_h)], x_vmem, dma_sem)
        cp.start()
        cp.wait()
        # im2col: concatenate the k*k taps along the lane (contraction) axis. Each tap slab is
        # Cin_p (a multiple of 128) wide, so every store is lane-aligned (no masked stores).
        for kh in range(k):
            for kw in range(k):
                if stride == 1:
                    xs = x_vmem[pl.ds(kh, tile_h), pl.ds(kw, out_w), :]
                else:
                    xs = x_vmem[pl.ds(kh, tile_h, stride), pl.ds(kw, out_w, stride), :]
                tap = kh * k + kw
                col_ref[:, tap * cin_p:(tap + 1) * cin_p] = xs.reshape(tile_m, cin_p)

    # One MXU matmul with K = k*k*Cin_p. Operands stay in their native dtype; f32 accumulate.
    acc = jnp.dot(col_ref[...], w_ref[...], preferred_element_type=jnp.float32)

    # Folded BatchNorm (eval) + LeakyReLU(0.1) epilogue on the lane-dense f32 tile.
    y = acc * scale_ref[...] + bias_ref[...]
    y = jnp.where(y > 0, y, 0.1 * y)
    o_ref[0] = y.astype(o_ref.dtype)


def basic_conv(x_nchw, weight, gamma, beta, running_mean, running_var,
               *, kernel_size, stride=1, eps=1e-5):
    """BasicConv forward. x_nchw: (N, Cin, H, W); weight: (Cout, Cin, k, k) (PyTorch layouts).

    Returns (N, Cout, Ho, Wo), matching the PyTorch module in eval mode.
    """
    n, cin, h, w = x_nchw.shape
    cout = weight.shape[0]
    k = kernel_size
    pad = k // 2
    out_h = (h + 2 * pad - k) // stride + 1
    out_w = (w + 2 * pad - k) // stride + 1
    wp = w + 2 * pad
    dtype = x_nchw.dtype
    itemsize = jnp.dtype(dtype).itemsize

    # Lane-dense channel padding (multiples of 128) for the MXU / stores.
    cin_p = _round_up(cin, 128)
    cout_p = _round_up(cout, 128)
    cout_tile = 256 if cout_p % 256 == 0 else 128
    kk_p = k * k * cin_p

    # Row tiling: TILE_M = tile_h * out_w output pixels per matmul; keep TILE_M a multiple of 8
    # (sublane granularity) and small enough for a conservative (v7x-safe) VMEM budget.
    granule = 8 // math.gcd(out_w, 8)
    target_m = 128
    tile_h = granule * max(1, target_m // (granule * out_w))
    tile_h = min(tile_h, granule * _cdiv(out_h, granule))

    def _vmem_bytes(th):
        tm = th * out_w
        halo = (th - 1) * stride + k
        return (halo * wp * cin_p * itemsize          # input halo scratch
                + tm * kk_p * itemsize                # im2col scratch
                + 2 * kk_p * cout_tile * itemsize     # weight block (double-buffered)
                + 2 * tm * cout_tile * itemsize       # output block (double-buffered)
                + 4 * cout_tile * 4)                  # scale / bias blocks

    vmem_budget = 24 * 1024 * 1024                    # headroom for v7x's 64 MiB physical VMEM
    while tile_h > granule and _vmem_bytes(tile_h) > vmem_budget:
        tile_h -= granule

    tile_m = tile_h * out_w
    halo_h = (tile_h - 1) * stride + k
    num_h = _cdiv(out_h, tile_h)
    num_ct = cout_p // cout_tile

    # ---- wrapper-side layout plumbing (plain XLA) ----
    # NCHW -> NHWC, spatial zero padding (+ extra bottom rows so every halo DMA stays in
    # bounds), channel zero padding to cin_p.
    h_needed = (num_h * tile_h - 1) * stride + k
    bottom_pad = max(0, h_needed - h - pad)
    x_nhwc = jnp.transpose(x_nchw, (0, 2, 3, 1))
    x_p = jnp.pad(x_nhwc, ((0, 0), (pad, bottom_pad), (pad, pad), (0, cin_p - cin)))

    # OIHW -> (k*k*Cin_p, Cout_p) im2col weight matrix; row order (kh, kw, cin) matches col_ref.
    w_hwio = jnp.transpose(weight, (2, 3, 1, 0))
    w_pad = jnp.pad(w_hwio, ((0, 0), (0, 0), (0, cin_p - cin), (0, cout_p - cout)))
    w_mat = w_pad.reshape(kk_p, cout_p).astype(dtype)

    # Fold eval-mode BatchNorm into per-channel scale/bias (f32), padded to cout_p lanes.
    scale = (gamma / jnp.sqrt(running_var + eps)).astype(jnp.float32)
    bias = (beta - running_mean * scale).astype(jnp.float32)
    scale_p = jnp.pad(scale, (0, cout_p - cout)).reshape(1, cout_p)
    bias_p = jnp.pad(bias, (0, cout_p - cout)).reshape(1, cout_p)

    kernel = functools.partial(
        _basic_conv_kernel,
        kernel_size=k, stride=stride, tile_h=tile_h, out_w=out_w, cin_p=cin_p)

    flops = int(2 * n * out_h * out_w * k * k * cin * cout)
    bytes_accessed = int(n * (pad + h + bottom_pad) * wp * cin_p * itemsize
                         + kk_p * cout_p * itemsize
                         + n * num_h * tile_m * cout_p * itemsize)

    out_flat = pl.pallas_call(
        kernel,
        out_shape=jax.ShapeDtypeStruct((n, num_h * tile_m, cout_p), dtype),
        grid_spec=pltpu.PrefetchScalarGridSpec(
            num_scalar_prefetch=0,
            grid=(n, num_h, num_ct),
            in_specs=[
                pl.BlockSpec(memory_space=pl.ANY),                           # x stays in HBM
                pl.BlockSpec((kk_p, cout_tile), lambda b, ht, ct: (0, ct)),  # weights
                pl.BlockSpec((1, cout_tile), lambda b, ht, ct: (0, ct)),     # BN scale
                pl.BlockSpec((1, cout_tile), lambda b, ht, ct: (0, ct)),     # BN bias
            ],
            out_specs=pl.BlockSpec((1, tile_m, cout_tile),
                                   lambda b, ht, ct: (b, ht, ct)),
            scratch_shapes=[
                pltpu.VMEM((halo_h, wp, cin_p), dtype),    # input halo
                pltpu.VMEM((tile_m, kk_p), dtype),         # im2col tile
                pltpu.SemaphoreType.DMA,                   # halo DMA semaphore
            ],
        ),
        compiler_params=pltpu.CompilerParams(
            dimension_semantics=("parallel", "parallel", "arbitrary"),
            vmem_limit_bytes=48 * 1024 * 1024),
        cost_estimate=pl.CostEstimate(flops=flops, transcendentals=0,
                                      bytes_accessed=bytes_accessed),
    )(x_p, w_mat, scale_p, bias_p)

    # (N, num_h*tile_m, Cout_p) -> (N, Ho, Wo, Cout) -> NCHW, dropping row/channel padding.
    out = out_flat[:, :out_h * out_w, :cout].reshape(n, out_h, out_w, cout)
    return jnp.transpose(out, (0, 3, 1, 2))


def _reference(x_nchw, weight, gamma, beta, running_mean, running_var,
               *, kernel_size, stride=1, eps=1e-5):
    pad = kernel_size // 2
    x_nhwc = jnp.transpose(x_nchw, (0, 2, 3, 1)).astype(jnp.float32)
    w_hwio = jnp.transpose(weight, (2, 3, 1, 0)).astype(jnp.float32)
    y = lax.conv_general_dilated(
        x_nhwc, w_hwio, window_strides=(stride, stride),
        padding=[(pad, pad), (pad, pad)],
        dimension_numbers=("NHWC", "HWIO", "NHWC"))
    scale = gamma / jnp.sqrt(running_var + eps)
    bias = beta - running_mean * scale
    y = y * scale[None, None, None, :] + bias[None, None, None, :]
    y = jnp.where(y > 0, y, 0.1 * y)
    return jnp.transpose(y, (0, 3, 1, 2)).astype(x_nchw.dtype)


if __name__ == "__main__":
    key = jax.random.PRNGKey(0)

    # (N, Cin, H, W, Cout, k, stride): the stride-1 case exercises two row tiles (halo reuse),
    # the stride-2 case exercises the strided im2col path.
    configs = [(2, 4, 16, 16, 8, 3, 1),
               (2, 4, 16, 16, 8, 3, 2)]

    for (N, CIN, H, W, COUT, K, STRIDE) in configs:
        key, kx, kw, kg, kb, km, kv = jax.random.split(key, 7)
        x = jax.random.normal(kx, (N, CIN, H, W), dtype=jnp.float32)
        weight = jax.random.normal(kw, (COUT, CIN, K, K), dtype=jnp.float32) * 0.1
        gamma = 1.0 + 0.1 * jax.random.normal(kg, (COUT,), dtype=jnp.float32)
        beta = 0.1 * jax.random.normal(kb, (COUT,), dtype=jnp.float32)
        running_mean = 0.1 * jax.random.normal(km, (COUT,), dtype=jnp.float32)
        running_var = jnp.abs(1.0 + 0.1 * jax.random.normal(kv, (COUT,), dtype=jnp.float32))

        out = basic_conv(x, weight, gamma, beta, running_mean, running_var,
                         kernel_size=K, stride=STRIDE)
        out = jax.block_until_ready(out)

        ref = _reference(x, weight, gamma, beta, running_mean, running_var,
                         kernel_size=K, stride=STRIDE)
        pad = K // 2
        OH = (H + 2 * pad - K) // STRIDE + 1
        OW = (W + 2 * pad - K) // STRIDE + 1
        assert out.shape == (N, COUT, OH, OW), (out.shape, (N, COUT, OH, OW))
        err = float(jnp.max(jnp.abs(out - ref)))
        assert jnp.allclose(out, ref, atol=1e-3, rtol=1e-3), (
            f"mismatch vs reference (stride={STRIDE}), max abs err {err}")

    print("KERNEL_OK")
</pallas_src>

<mosaic_0001>
module attributes {stable_mosaic.version = 11 : i64} {
  func.func @_basic_conv_kernel(%arg0: i32, %arg1: i32, %arg2: i32, %arg3: memref<2x18x18x128xf32, #tpu.memory_space<any>>, %arg4: memref<1152x128xf32, #tpu.memory_space<vmem>>, %arg5: memref<1x128xf32, #tpu.memory_space<vmem>>, %arg6: memref<1x128xf32, #tpu.memory_space<vmem>>, %arg7: memref<1x128x128xf32, #tpu.memory_space<vmem>>, %arg8: memref<10x18x128xf32, #tpu.memory_space<vmem>>, %arg9: memref<128x1152xf32, #tpu.memory_space<vmem>>, %arg10: memref<!tpu.dma_semaphore, #tpu.memory_space<semaphore_mem>>) attributes {dimension_semantics = [#tpu.dimension_semantics<parallel>, #tpu.dimension_semantics<parallel>, #tpu.dimension_semantics<arbitrary>], iteration_bounds = array<i64: 2, 2, 1>, scalar_prefetch = 0 : i64, scratch_operands = 3 : i64, tpu.core_type = #tpu.core_type<tc>, window_params = [{}, {transform_indices = @transform_1, window_bounds = array<i64: 1152, 128>}, {transform_indices = @transform_2, window_bounds = array<i64: 1, 128>}, {transform_indices = @transform_3, window_bounds = array<i64: 1, 128>}, {transform_indices = @transform_4, window_bounds = array<i64: 1, 128, 128>}]} {
    %c0_i32 = arith.constant 0 : i32
    %0 = arith.cmpi eq, %arg2, %c0_i32 : i32
    %1 = arith.extui %0 : i1 to i32
    %c0_i32_0 = arith.constant 0 : i32
    %2 = arith.cmpi ne, %1, %c0_i32_0 : i32
    scf.if %2 {
      %c8_i32 = arith.constant 8 : i32
      %20 = arith.muli %arg1, %c8_i32 : i32
      %21 = tpu.assume_multiple %20, 8 : i32
      %c0_i32_13 = arith.constant 0 : i32
      %c0_i32_14 = arith.constant 0 : i32
      %22 = tpu.memref_slice %arg3[%arg0, %21, %c0_i32_13, %c0_i32_14] : memref<2x18x18x128xf32, #tpu.memory_space<any>> -> memref<1x10x18x128xf32, #tpu.memory_space<any>>
      %23 = tpu.memref_squeeze %22 : memref<1x10x18x128xf32, #tpu.memory_space<any>> -> memref<10x18x128xf32, #tpu.memory_space<any>>
      tpu.enqueue_dma source(%23 : memref<10x18x128xf32, #tpu.memory_space<any>>) target(%arg8 : memref<10x18x128xf32, #tpu.memory_space<vmem>>) target_semaphore(%arg10 : memref<!tpu.dma_semaphore, #tpu.memory_space<semaphore_mem>>)
      %c0_i32_15 = arith.constant 0 : i32
      %c0_i32_16 = arith.constant 0 : i32
      %24 = tpu.memref_slice %arg3[%arg0, %21, %c0_i32_15, %c0_i32_16] : memref<2x18x18x128xf32, #tpu.memory_space<any>> -> memref<1x10x18x128xf32, #tpu.memory_space<any>>
      %25 = tpu.memref_squeeze %24 : memref<1x10x18x128xf32, #tpu.memory_space<any>> -> memref<10x18x128xf32, #tpu.memory_space<any>>
      tpu.wait_dma2 semaphore(%arg10 : memref<!tpu.dma_semaphore, #tpu.memory_space<semaphore_mem>>) src(%25 : memref<10x18x128xf32, #tpu.memory_space<any>>) dst(%arg8 : memref<10x18x128xf32, #tpu.memory_space<vmem>>)
      %c0_17 = arith.constant 0 : index
      %c0_18 = arith.constant 0 : index
      %c0_19 = arith.constant 0 : index
      %26 = vector.load %arg8[%c0_17, %c0_18, %c0_19] : memref<10x18x128xf32, #tpu.memory_space<vmem>>, vector<8x16x128xf32>
      %27 = vector.shape_cast %26 : vector<8x16x128xf32> to vector<128x128xf32>
      %c0_20 = arith.constant 0 : index
      %c0_21 = arith.constant 0 : index
      %28 = vector.load %arg9[%c0_20, %c0_21] : memref<128x1152xf32, #tpu.memory_space<vmem>>, vector<128x128xf32>
      tpu.vector_store %arg9[%c0_20, %c0_21], %27 {strides = array<i32>} : memref<128x1152xf32, #tpu.memory_space<vmem>>, vector<128x128xf32>,
      %c0_22 = arith.constant 0 : index
      %c1 = arith.constant 1 : index
      %c0_23 = arith.constant 0 : index
      %29 = vector.load %arg8[%c0_22, %c1, %c0_23] : memref<10x18x128xf32, #tpu.memory_space<vmem>>, vector<8x16x128xf32>
      %30 = vector.shape_cast %29 : vector<8x16x128xf32> to vector<128x128xf32>
      %c0_24 = arith.constant 0 : index
      %c128 = arith.constant 128 : index
      %31 = vector.load %arg9[%c0_24, %c128] : memref<128x1152xf32, #tpu.memory_space<vmem>>, vector<128x128xf32>
      tpu.vector_store %arg9[%c0_24, %c128], %30 {strides = array<i32>} : memref<128x1152xf32, #tpu.memory_space<vmem>>, vector<128x128xf32>,
      %c0_25 = arith.constant 0 : index
      %c2 = arith.constant 2 : index
      %c0_26 = arith.constant 0 : index
      %32 = vector.load %arg8[%c0_25, %c2, %c0_26] : memref<10x18x128xf32, #tpu.memory_space<vmem>>, vector<8x16x128xf32>
      %33 = vector.shape_cast %32 : vector<8x16x128xf32> to vector<128x128xf32>
      %c0_27 = arith.constant 0 : index
      %c256 = arith.constant 256 : index
      %34 = vector.load %arg9[%c0_27, %c256] : memref<128x1152xf32, #tpu.memory_space<vmem>>, vector<128x128xf32>
      tpu.vector_store %arg9[%c0_27, %c256], %33 {strides = array<i32>} : memref<128x1152xf32, #tpu.memory_space<vmem>>, vector<128x128xf32>,
      %c1_28 = arith.constant 1 : index
      %c0_29 = arith.constant 0 : index
      %c0_30 = arith.constant 0 : index
      %35 = vector.load %arg8[%c1_28, %c0_29, %c0_30] : memref<10x18x128xf32, #tpu.memory_space<vmem>>, vector<8x16x128xf32>
      %36 = vector.shape_cast %35 : vector<8x16x128xf32> to vector<128x128xf32>
      %c0_31 = arith.constant 0 : index
      %c384 = arith.constant 384 : index
      %37 = vector.load %arg9[%c0_31, %c384] : memref<128x1152xf32, #tpu.memory_space<vmem>>, vector<128x128xf32>
      tpu.vector_store %arg9[%c0_31, %c384], %36 {strides = array<i32>} : memref<128x1152xf32, #tpu.memory_space<vmem>>, vector<128x128xf32>,
      %c1_32 = arith.constant 1 : index
      %c1_33 = arith.constant 1 : index
      %c0_34 = arith.constant 0 : index
      %38 = vector.load %arg8[%c1_32, %c1_33, %c0_34] : memref<10x18x128xf32, #tpu.memory_space<vmem>>, vector<8x16x128xf32>
      %39 = vector.shape_cast %38 : vector<8x16x128xf32> to vector<128x128xf32>
      %c0_35 = arith.constant 0 : index
      %c512 = arith.constant 512 : index
      %40 = vector.load %arg9[%c0_35, %c512] : memref<128x1152xf32, #tpu.memory_space<vmem>>, vector<128x128xf32>
      tpu.vector_store %arg9[%c0_35, %c512], %39 {strides = array<i32>} : memref<128x1152xf32, #tpu.memory_space<vmem>>, vector<128x128xf32>,
      %c1_36 = arith.constant 1 : index
      %c2_37 = arith.constant 2 : index
      %c0_38 = arith.constant 0 : index
      %41 = vector.load %arg8[%c1_36, %c2_37, %c0_38] : memref<10x18x128xf32, #tpu.memory_space<vmem>>, vector<8x16x128xf32>
      %42 = vector.shape_cast %41 : vector<8x16x128xf32> to vector<128x128xf32>
      %c0_39 = arith.constant 0 : index
      %c640 = arith.constant 640 : index
      %43 = vector.load %arg9[%c0_39, %c640] : memref<128x1152xf32, #tpu.memory_space<vmem>>, vector<128x128xf32>
      tpu.vector_store %arg9[%c0_39, %c640], %42 {strides = array<i32>} : memref<128x1152xf32, #tpu.memory_space<vmem>>, vector<128x128xf32>,
      %c2_40 = arith.constant 2 : index
      %c0_41 = arith.constant 0 : index
      %c0_42 = arith.constant 0 : index
      %44 = vector.load %arg8[%c2_40, %c0_41, %c0_42] : memref<10x18x128xf32, #tpu.memory_space<vmem>>, vector<8x16x128xf32>
      %45 = vector.shape_cast %44 : vector<8x16x128xf32> to vector<128x128xf32>
      %c0_43 = arith.constant 0 : index
      %c768 = arith.constant 768 : index
      %46 = vector.load %arg9[%c0_43, %c768] : memref<128x1152xf32, #tpu.memory_space<vmem>>, vector<128x128xf32>
      tpu.vector_store %arg9[%c0_43, %c768], %45 {strides = array<i32>} : memref<128x1152xf32, #tpu.memory_space<vmem>>, vector<128x128xf32>,
      %c2_44 = arith.constant 2 : index
      %c1_45 = arith.constant 1 : index
      %c0_46 = arith.constant 0 : index
      %47 = vector.load %arg8[%c2_44, %c1_45, %c0_46] : memref<10x18x128xf32, #tpu.memory_space<vmem>>, vector<8x16x128xf32>
      %48 = vector.shape_cast %47 : vector<8x16x128xf32> to vector<128x128xf32>
      %c0_47 = arith.constant 0 : index
      %c896 = arith.constant 896 : index
      %49 = vector.load %arg9[%c0_47, %c896] : memref<128x1152xf32, #tpu.memory_space<vmem>>, vector<128x128xf32>
      tpu.vector_store %arg9[%c0_47, %c896], %48 {strides = array<i32>} : memref<128x1152xf32, #tpu.memory_space<vmem>>, vector<128x128xf32>,
      %c2_48 = arith.constant 2 : index
      %c2_49 = arith.constant 2 : index
      %c0_50 = arith.constant 0 : index
      %50 = vector.load %arg8[%c2_48, %c2_49, %c0_50] : memref<10x18x128xf32, #tpu.memory_space<vmem>>, vector<8x16x128xf32>
      %51 = vector.shape_cast %50 : vector<8x16x128xf32> to vector<128x128xf32>
      %c0_51 = arith.constant 0 : index
      %c1024 = arith.constant 1024 : index
      %52 = vector.load %arg9[%c0_51, %c1024] : memref<128x1152xf32, #tpu.memory_space<vmem>>, vector<128x128xf32>
      tpu.vector_store %arg9[%c0_51, %c1024], %51 {strides = array<i32>} : memref<128x1152xf32, #tpu.memory_space<vmem>>, vector<128x128xf32>,
    } else {
    }
    %c0 = arith.constant 0 : index
    %c0_1 = arith.constant 0 : index
    %3 = vector.load %arg9[%c0, %c0_1] : memref<128x1152xf32, #tpu.memory_space<vmem>>, vector<128x1152xf32>
    %c0_2 = arith.constant 0 : index
    %c0_3 = arith.constant 0 : index
    %4 = vector.load %arg4[%c0_2, %c0_3] : memref<1152x128xf32, #tpu.memory_space<vmem>>, vector<1152x128xf32>
    %cst = arith.constant dense<0.000000e+00> : vector<128x128xf32>
    %5 = tpu.matmul %3, %4, %cst {dimension_numbers = #tpu.dot_dimension_numbers<[1], [0], [0], [1], [0, 0, 1, 1], [], []>} : vector<128x1152xf32>, vector<1152x128xf32>, vector<128x128xf32> -> vector<128x128xf32>
    %c0_4 = arith.constant 0 : index
    %c0_5 = arith.constant 0 : index
    %6 = vector.load %arg5[%c0_4, %c0_5] : memref<1x128xf32, #tpu.memory_space<vmem>>, vector<1x128xf32>
    %7 = vector.broadcast %6 : vector<1x128xf32> to vector<128x128xf32>
    %8 = arith.mulf %5, %7 : vector<128x128xf32>
    %c0_6 = arith.constant 0 : index
    %c0_7 = arith.constant 0 : index
    %9 = vector.load %arg6[%c0_6, %c0_7] : memref<1x128xf32, #tpu.memory_space<vmem>>, vector<1x128xf32>
    %10 = vector.broadcast %9 : vector<1x128xf32> to vector<128x128xf32>
    %11 = arith.addf %8, %10 : vector<128x128xf32>
    %cst_8 = arith.constant 0.000000e+00 : f32
    %12 = vector.broadcast %cst_8 : f32 to vector<128x128xf32>
    %13 = arith.cmpf ogt, %11, %12 : vector<128x128xf32>
    %cst_9 = arith.constant 1.000000e-01 : f32
    %14 = vector.broadcast %cst_9 : f32 to vector<128x128xf32>
    %15 = arith.mulf %14, %11 : vector<128x128xf32>
    %16 = arith.select %13, %11, %15 : vector<128x128xi1>, vector<128x128xf32>
    %c0_10 = arith.constant 0 : index
    %c0_11 = arith.constant 0 : index
    %c0_12 = arith.constant 0 : index
    %17 = vector.load %arg7[%c0_10, %c0_11, %c0_12] : memref<1x128x128xf32, #tpu.memory_space<vmem>>, vector<1x128x128xf32>
    %18 = vector.shape_cast %17 : vector<1x128x128xf32> to vector<128x128xf32>
    %19 = vector.shape_cast %16 : vector<128x128xf32> to vector<1x128x128xf32>
    tpu.vector_store %arg7[%c0_10, %c0_11, %c0_12], %19 {strides = array<i32>} : memref<1x128x128xf32, #tpu.memory_space<vmem>>, vector<1x128x128xf32>,
    return
  }
  func.func @transform_1(%arg0: i32, %arg1: i32, %arg2: i32) -> (i32, i32) {
    %c0_i32 = arith.constant 0 : i32
    %c0_i32_0 = arith.constant 0 : i32
    return %c0_i32, %arg2 : i32, i32
  }
  func.func @transform_2(%arg0: i32, %arg1: i32, %arg2: i32) -> (i32, i32) {
    %c0_i32 = arith.constant 0 : i32
    %c0_i32_0 = arith.constant 0 : i32
    return %c0_i32, %arg2 : i32, i32
  }
  func.func @transform_3(%arg0: i32, %arg1: i32, %arg2: i32) -> (i32, i32) {
    %c0_i32 = arith.constant 0 : i32
    %c0_i32_0 = arith.constant 0 : i32
    return %c0_i32, %arg2 : i32, i32
  }
  func.func @transform_4(%arg0: i32, %arg1: i32, %arg2: i32) -> (i32, i32, i32) {
    %c0_i32 = arith.constant 0 : i32
    return %arg0, %arg1, %arg2 : i32, i32, i32
  }
}

</mosaic_0001>

<bundles_post_ra>
// kernel: tpu_custom_call.1
= control target key start
LH: loop header
LB: loop body
LE: loop exit
PB: predicated region body
PF: predicated region fallthrough
CT: control target
= control target key end

     0   :  { %9 = vsyncpa [#allocation6], 0  ;;  %s3708_s0 = inlined_call_operand.vmem [shape: f32[2,18,18,128], index: 0, kind: input, shape index: {}]   ;;  %s3709_s1 = inlined_call_operand.vmem [shape: f32[1152,128], index: 1, kind: input, shape index: {}]   ;;  %s3710_s2 = inlined_call_operand.vmem [shape: f32[1,128], index: 2, kind: input, shape index: {}]   ;;  %s3711_s3 = inlined_call_operand.vmem [shape: f32[1,128], index: 3, kind: input, shape index: {}]   ;;  %s3712_s4 = inlined_call_operand.hbm [shape: f32[2,256,128], index: 4, kind: output, shape index: {}]  }
   0x1   :  { %11 = vsyncpa [#allocation6 + $0x1], 0  ;;  %s2733_s15 = smov 0   ;;  %s2735_s16 = smov 0  }
   0x2   :  { %s2737_s17 = smov 0   ;;  %s2739_s18 = smov 0  }
   0x3   :  { %s2741_s19 = smov 0   ;;  %s2743_s20 = smov 0  }
   0x4   :  { %s2745_s21 = smov 0   ;;  %s2747_s22 = smov 0  }
   0x5 LB: > { %s1921_s23 = sadd.s32 4294967295, %s2703_s22   ;;  %s1922_s24 = sadd.s32 4294967294, %s2703_s22   ;;  %s2703_s22 = sphi %s2747_s22, %s17_s22   ;;  %s2699_s21 = sphi %s2745_s21, %s3723_s21   ;;  %s2695_s20 = sphi %s2743_s20, %s3722_s20   ;;  %s2691_s19 = sphi %s2741_s19, %s3721_s19   ;;  %s2687_s18 = sphi %s2739_s18, %s3720_s18   ;;  %s2683_s17 = sphi %s2737_s17, %s3719_s17   ;;  %s2679_s16 = sphi %s2735_s16, %s3718_s16   ;;  %s2675_s15 = sphi %s2733_s15, %s3717_s15  }
   0x6   : > { %s32_s25 = sadd.s32 1, %s2695_s20  ;;  %s36_s26 = sadd.s32 1, %s2699_s21 }
   0x7   : > { %p34_p0 = scmp.ge.s32.totalorder %s32_s25, 2  ;;  %p135_p1 = scmp.ne.s32.totalorder %s2683_s17, %s2679_s16 }
   0x8   : > { %p136_p2 = scmp.eq.s32.totalorder %s1921_s23, 3  ;;  %p141_p5 = scmp.ne.s32.totalorder %s2679_s16, %s2675_s15 }
   0x9   : > { %s3725_s25 = smov (%p34_p0, %s32_s25), 0  ;;  %s3727_s26 = smov (!%p34_p0, %s36_s26), %s2699_s21 }
   0xa   : > { %s119_s27 = ssub.s32 %s2695_s20, %s3725_s25  ;;  %p2784_p3 = por %p136_p2, %p135_p1 }
   0xb   : > { %p38_p4 = scmp.ge.s32.totalorder %s3727_s26, 2  ;;  %p142_p6 = scmp.eq.s32.totalorder %s1922_s24, 3 }
   0xc   : > { %p1927_p7 = scmp.ge.s32.totalorder %s2703_s22, 1  ;;  %p179_p9 = scmp.lt.s32.totalorder %s2703_s22, 5 }
   0xd   : > { %s3729_s26 = smov (%p38_p4, %s3727_s26), 0  ;;  %p2793_p8 = por %p142_p6, %p141_p5 }
   0xe   : > { %s118_s30 = ssub.s32 %s2699_s21, %s3729_s26  ;;  %s125_s5 = sadd.s32 1, %s2683_s17 }
   0xf   : > { %s120_s6 = sor.u32 %s119_s27, %s118_s30  ;;  %p180_p10 = pnand %p1927_p7, %p179_p9 }
  0x10   : > { %p123_p11 = scmp.eq.s32.totalorder %s120_s6, 0  ;;  %s3713_s8 = sand.u32 (!%p180_p10), 1, %s2679_s16  }
  0x11   : > { %183 = sbr.rel (%p180_p10) target bundleno = 465 (0x1d1), region = 32  ;;  %s2808_s10 = sshll.u32 (!%p180_p10), %s3713_s8, 7 }
  0x12   : > { %s2802_s7 = scalar_select %p123_p11, %s2683_s17, %s125_s5  }
  0x13   : > { %s1930_s9 = smul.u32 (!%p180_p10), 192, %s2687_s18  ;;  %s2847_s24 = scalar_lea.vmem (!%p180_p10), [#allocation5], %s2808_s10 }
  0x14   : > { %s225_s11 = smul.u32 (!%p180_p10), 432, %s2691_s19 }
  0x16   : > { %s226_s12 = sadd.s32 (!%p180_p10), %s1930_s9, %s225_s11 }
  0x17   : > { %s2814_s23 = scalar_lea.vmem (!%p180_p10), %s3708_s0, %s226_s12 }
  0x18   : > { %v283_v0 = vld [vmem:[%s2814_s23] sm:$0xff]  ;;  %v285_v1 = vld [vmem:[%s2814_s23 + $0x8] sm:$0xff]  ;;  %v287_v2 = vld [vmem:[%s2814_s23 + $0x18] sm:$0xff] }
  0x19   : > { %284 = vst [vmem:[#allocation2] sm:$0xff] %v283_v0  ;;  %286 = vst [vmem:[#allocation2 + $0x8] sm:$0xff] %v285_v1  ;;  %v289_v3 = vld [vmem:[%s2814_s23 + $0x20] sm:$0xff]  ;;  %v291_v4 = vld [vmem:[%s2814_s23 + $0x30] sm:$0xff] }
  0x1a   : > { %288 = vst [vmem:[#allocation2 + $0x18] sm:$0xff] %v287_v2  ;;  %v293_v5 = vld [vmem:[%s2814_s23 + $0x38] sm:$0xff]  ;;  %290 = vst [vmem:[#allocation2 + $0x20] sm:$0xff] %v289_v3  ;;  %v295_v6 = vld [vmem:[%s2814_s23 + $0x48] sm:$0xff] }
  0x1b   : > { %292 = vst [vmem:[#allocation2 + $0x30] sm:$0xff] %v291_v4  ;;  %294 = vst [vmem:[#allocation2 + $0x38] sm:$0xff] %v293_v5  ;;  %v297_v7 = vld [vmem:[%s2814_s23 + $0x50] sm:$0xff]  ;;  %v299_v8 = vld [vmem:[%s2814_s23 + $0x60] sm:$0xff] }
  0x1c   : > { %296 = vst [vmem:[#allocation2 + $0x48] sm:$0xff] %v295_v6  ;;  %298 = vst [vmem:[#allocation2 + $0x50] sm:$0xff] %v297_v7  ;;  %v301_v9 = vld [vmem:[%s2814_s23 + $0x68] sm:$0xff]  ;;  %v303_v10 = vld [vmem:[%s2814_s23 + $0x78] sm:$0xff] }
  0x1d   : > { %300 = vst [vmem:[#allocation2 + $0x60] sm:$0xff] %v299_v8  ;;  %v305_v11 = vld [vmem:[%s2814_s23 + $0x80] sm:$0xff]  ;;  %302 = vst [vmem:[#allocation2 + $0x68] sm:$0xff] %v301_v9  ;;  %v307_v12 = vld [vmem:[%s2814_s23 + $0x90] sm:$0xff] }
  0x1e   : > { %304 = vst [vmem:[#allocation2 + $0x78] sm:$0xff] %v303_v10  ;;  %306 = vst [vmem:[#allocation2 + $0x80] sm:$0xff] %v305_v11  ;;  %v309_v13 = vld [vmem:[%s2814_s23 + $0x98] sm:$0xff]  ;;  %v311_v14 = vld [vmem:[%s2814_s23 + $0xa8] sm:$0xff] }
  0x1f   : > { %308 = vst [vmem:[#allocation2 + $0x90] sm:$0xff] %v307_v12  ;;  %310 = vst [vmem:[#allocation2 + $0x98] sm:$0xff] %v309_v13  ;;  %v313_v15 = vld [vmem:[%s2814_s23 + $0xb0] sm:$0xff]  ;;  %v315_v16 = vld [vmem:[%s2814_s23 + $0xc0] sm:$0xff] }
  0x20   : > { %312 = vst [vmem:[#allocation2 + $0xa8] sm:$0xff] %v311_v14  ;;  %v317_v17 = vld [vmem:[%s2814_s23 + $0xc8] sm:$0xff]  ;;  %314 = vst [vmem:[#allocation2 + $0xb0] sm:$0xff] %v313_v15  ;;  %v319_v18 = vld [vmem:[%s2814_s23 + $0xd8] sm:$0xff] }
  0x21   : > { %316 = vst [vmem:[#allocation2 + $0xc0] sm:$0xff] %v315_v16  ;;  %318 = vst [vmem:[#allocation2 + $0xc8] sm:$0xff] %v317_v17  ;;  %v321_v19 = vld [vmem:[%s2814_s23 + $0xe0] sm:$0xff]  ;;  %v1931_v20 = vld [vmem:[%s2814_s23 + $0x10] sm:$0x3] }
  0x22   : > { %320 = vst [vmem:[#allocation2 + $0xd8] sm:$0xff] %v319_v18  ;;  %322 = vst [vmem:[#allocation2 + $0xe0] sm:$0xff] %v321_v19  ;;  %v1932_v21 = vld [vmem:[%s2814_s23 + $0x28] sm:$0x3]  ;;  %v1933_v22 = vld [vmem:[%s2814_s23 + $0x40] sm:$0x3] }
  0x23   : > { %333 = vst [vmem:[#allocation2 + $0x10] sm:$0x3] %v1931_v20  ;;  %v1934_v23 = vld [vmem:[%s2814_s23 + $0x58] sm:$0x3]  ;;  %335 = vst [vmem:[#allocation2 + $0x28] sm:$0x3] %v1932_v21 }
  0x24   : > { %337 = vst [vmem:[#allocation2 + $0x40] sm:$0x3] %v1933_v22  ;;  %339 = vst [vmem:[#allocation2 + $0x58] sm:$0x3] %v1934_v23  ;;  %v1935_v24 = vld [vmem:[%s2814_s23 + $0x70] sm:$0x3] }
  0x25   : > { %v1936_v25 = vld [vmem:[%s2814_s23 + $0x88] sm:$0x3]  ;;  %v1937_v26 = vld [vmem:[%s2814_s23 + $0xa0] sm:$0x3]  ;;  %341 = vst [vmem:[#allocation2 + $0x70] sm:$0x3] %v1935_v24 }
  0x26   : > { %343 = vst [vmem:[#allocation2 + $0x88] sm:$0x3] %v1936_v25  ;;  %345 = vst [vmem:[#allocation2 + $0xa0] sm:$0x3] %v1937_v26  ;;  %v1938_v27 = vld [vmem:[%s2814_s23 + $0xb8] sm:$0x3] }
  0x27   : > { %v1939_v28 = vld [vmem:[%s2814_s23 + $0xd0] sm:$0x3]  ;;  %v1940_v29 = vld [vmem:[%s2814_s23 + $0xe8] sm:$0x3]  ;;  %347 = vst [vmem:[#allocation2 + $0xb8] sm:$0x3] %v1938_v27 }
  0x28   : > { %349 = vst [vmem:[#allocation2 + $0xd0] sm:$0x3] %v1939_v28  ;;  %351 = vst [vmem:[#allocation2 + $0xe8] sm:$0x3] %v1940_v29 }
  0x29   : > { %355 = vsyncadd [#allocation4], 2880 }
  0x2a   : > { %2667 = dma.done.wait [#allocation4], 2880 }
  0x2b   : > { %2668 = vsyncadd [#allocation4], 4294964416  ;;  %v810_v30 = vld [vmem:[%s3709_s1 + $0x80] sm:$0xff]  ;;  %v811_v31 = vld [vmem:[%s3709_s1 + $0x88] sm:$0xff]  ;;  %s1944_s14 = sshll.u32 %s2687_s18, 4  ;;  %s1945_s23 = sshll.u32 %s2691_s19, 5 }
  0x2c   : > { %v842_v32 = vld [vmem:[%s3709_s1 + $0x180] sm:$0xff]  ;;  %v2358_v33 = vpack.c.bf16 %v811_v31, %v810_v30  ;;  %v843_v34 = vld [vmem:[%s3709_s1 + $0x188] sm:$0xff]  ;;  %v812_v41 = vld [vmem:[%s3709_s1 + $0x90] sm:$0xff]  ;;  %s1787_s18 = sadd.s32 %s1945_s23, %s1944_s14  ;;  %s1790_s8 = sshll.u32 %s2847_s24, 4  ;;  %s3650_s8 = int_to_ptr.vmem [resolvable:$true] %s1790_s8 }
  0x2d   : > { %v794_v35 = vld [vmem:[%s3709_s1] sm:$0xff]  ;;  %v795_v36 = vld [vmem:[%s3709_s1 + $0x8] sm:$0xff]  ;;  %v2390_v37 = vpack.c.bf16 %v843_v34, %v842_v32  ;;  %v813_v43 = vld [vmem:[%s3709_s1 + $0x98] sm:$0xff]  ;;  %s1946_s19 = sshll.u32 %s1787_s18, 7  ;;  %s3716_s6 = sand.u32 1, %s2679_s16  }
  0x2e   : > { %v2360_v38 = vpack.c.bf16 %v795_v36, %v794_v35  ;;  %v826_v39 = vld [vmem:[%s3709_s1 + $0x100] sm:$0xff]  ;;  %v827_v40 = vld [vmem:[%s3709_s1 + $0x108] sm:$0xff]  ;;  %2359 = vmatprep.subr.bf16.mxu0 %v2358_v33  ;;  %v844_v44 = vld [vmem:[%s3709_s1 + $0x190] sm:$0xff]  ;;  %v2362_v46 = vpack.c.bf16 %v813_v43, %v812_v41  ;;  %s3648_s5 = scalar_lea.hbm %s3712_s4, %s1946_s19  ;;  %s3656_s9 = scalar_lea.sflag [#allocation6], %s3716_s6 }
  0x2f   : > { %v2392_v42 = vpack.c.bf16 %v827_v40, %v826_v39  ;;  %v845_v45 = vld [vmem:[%s3709_s1 + $0x198] sm:$0xff]  ;;  %2391 = vmatprep.subr.bf16.mxu1 %v2390_v37  ;;  %v796_v48 = vld [vmem:[%s3709_s1 + $0x10] sm:$0xff]  ;;  %v814_v53 = vld [vmem:[%s3709_s1 + $0xa0] sm:$0xff]  ;;  %s2607_s11 = scalar_lea.vmem %s3650_s8, 2048  ;;  %s2705_s12 = smov [#allocation5]  }
  0x30   : > { %2361 = vmatpush3.bf16.msra.mxu0 %v2360_v38  ;;  %v2394_v47 = vpack.c.bf16 %v845_v45, %v844_v44  ;;  %v797_v49 = vld [vmem:[%s3709_s1 + $0x18] sm:$0xff]  ;;  %v828_v50 = vld [vmem:[%s3709_s1 + $0x110] sm:$0xff]  ;;  %v815_v54 = vld [vmem:[%s3709_s1 + $0xa8] sm:$0xff]  ;;  %p2608_p12 = scmp.ne.s32.totalorder %s3650_s8, %s2607_s11  ;;  %s2611_s13 = sshll.u32 %s2705_s12, 4  ;;  %s2612_s13 = int_to_ptr.vmem [resolvable:$false] %s2611_s13 }
  0x31   : > { %2393 = vmatpush3.bf16.msra.mxu1 %v2392_v42  ;;  %v2364_v51 = vpack.c.bf16 %v797_v49, %v796_v48  ;;  %v829_v52 = vld [vmem:[%s3709_s1 + $0x118] sm:$0xff]  ;;  %2363 = vmatprep.subr.bf16.mxu0 %v2362_v46  ;;  %v2366_v56 = vpack.c.bf16 %v815_v54, %v814_v53  ;;  %v846_v57 = vld [vmem:[%s3709_s1 + $0x1a0] sm:$0xff]  ;;  %v847_v58 = vld [vmem:[%s3709_s1 + $0x1a8] sm:$0xff]  ;;  %s2613_s10 = scalar_lea.vmem %s2612_s13, 4096  ;;  %p2614_p1 = scmp.lt.s32.totalorder %s3650_s8, %s2612_s13 }
  0x32   : > { %2395 = vmatprep.subr.bf16.mxu1 %v2394_v47  ;;  %v2396_v55 = vpack.c.bf16 %v829_v52, %v828_v50  ;;  %v798_v59 = vld [vmem:[%s3709_s1 + $0x20] sm:$0xff]  ;;  %v2398_v60 = vpack.c.bf16 %v847_v58, %v846_v57  ;;  %v799_v61 = vld [vmem:[%s3709_s1 + $0x28] sm:$0xff]  ;;  %v816_v1 = vld [vmem:[%s3709_s1 + $0xb0] sm:$0xff]  ;;  %p2609_p13 = pnand %p2608_p12, %p2784_p3  ;;  %p2615_p2 = scmp.lt.s32.totalorder %s2613_s10, %s2607_s11 }
  0x33   : > { %v830_v62 = vld [vmem:[%s3709_s1 + $0x120] sm:$0xff]  ;;  %v831_v63 = vld [vmem:[%s3709_s1 + $0x128] sm:$0xff]  ;;  %v2368_v0 = vpack.c.bf16 %v799_v61, %v798_v59  ;;  %v817_v2 = vld [vmem:[%s3709_s1 + $0xb8] sm:$0xff] }
  0x34   : > { %2365 = vmatpush3.bf16.msra.mxu0 %v2364_v51  ;;  %v848_v3 = vld [vmem:[%s3709_s1 + $0x1b0] sm:$0xff]  ;;  %v2400_v4 = vpack.c.bf16 %v831_v63, %v830_v62  ;;  %v2370_v5 = vpack.c.bf16 %v817_v2, %v816_v1  ;;  %v849_v6 = vld [vmem:[%s3709_s1 + $0x1b8] sm:$0xff]  ;;  %v818_v12 = vld [vmem:[%s3709_s1 + $0xc0] sm:$0xff]  ;;  %p2610_p0 = pneg %p2609_p13  ;;  %p2616_p4 = por %p2615_p2, %p2614_p1 }
  0x35   : > { %2397 = vmatpush3.bf16.msra.mxu1 %v2396_v55  ;;  %2367 = vmatprep.subr.bf16.mxu0 %v2366_v56  ;;  %v800_v7 = vld [vmem:[%s3709_s1 + $0x30] sm:$0xff]  ;;  %v801_v8 = vld [vmem:[%s3709_s1 + $0x38] sm:$0xff]  ;;  %v2402_v9 = vpack.c.bf16 %v849_v6, %v848_v3  ;;  %v819_v13 = vld [vmem:[%s3709_s1 + $0xc8] sm:$0xff] }
  0x36   : > { %2399 = vmatprep.subr.bf16.mxu1 %v2398_v60  ;;  %v832_v10 = vld [vmem:[%s3709_s1 + $0x130] sm:$0xff]  ;;  %v833_v11 = vld [vmem:[%s3709_s1 + $0x138] sm:$0xff]  ;;  %v850_v14 = vld [vmem:[%s3709_s1 + $0x1c0] sm:$0xff]  ;;  %v2372_v16 = vpack.c.bf16 %v801_v8, %v800_v7  ;;  %v2374_v18 = vpack.c.bf16 %v819_v13, %v818_v12  ;;  %p2617_p5 = pnand %p2616_p4, %p2610_p0 }
  0x37   : > { %v851_v15 = vld [vmem:[%s3709_s1 + $0x1c8] sm:$0xff]  ;;  %v2404_v17 = vpack.c.bf16 %v833_v11, %v832_v10  ;;  %v802_v19 = vld [vmem:[%s3709_s1 + $0x40] sm:$0xff]  ;;  %v820_v24 = vld [vmem:[%s3709_s1 + $0xd0] sm:$0xff] }
  0x38   : > { %2369 = vmatpush3.bf16.msra.mxu0 %v2368_v0  ;;  %v803_v20 = vld [vmem:[%s3709_s1 + $0x48] sm:$0xff]  ;;  %v834_v21 = vld [vmem:[%s3709_s1 + $0x140] sm:$0xff]  ;;  %v2406_v22 = vpack.c.bf16 %v851_v15, %v850_v14  ;;  %v821_v25 = vld [vmem:[%s3709_s1 + $0xd8] sm:$0xff] }
  0x39   : > { %2401 = vmatpush3.bf16.msra.mxu1 %v2400_v4  ;;  %2371 = vmatprep.subr.bf16.mxu0 %v2370_v5  ;;  %v835_v23 = vld [vmem:[%s3709_s1 + $0x148] sm:$0xff]  ;;  %v852_v26 = vld [vmem:[%s3709_s1 + $0x1d0] sm:$0xff]  ;;  %v853_v27 = vld [vmem:[%s3709_s1 + $0x1d8] sm:$0xff]  ;;  %v2376_v28 = vpack.c.bf16 %v803_v20, %v802_v19  ;;  %v2378_v30 = vpack.c.bf16 %v821_v25, %v820_v24 }
  0x3a   : > { %2403 = vmatprep.subr.bf16.mxu1 %v2402_v9  ;;  %v2408_v29 = vpack.c.bf16 %v835_v23, %v834_v21  ;;  %v804_v31 = vld [vmem:[%s3709_s1 + $0x50] sm:$0xff]  ;;  %v805_v32 = vld [vmem:[%s3709_s1 + $0x58] sm:$0xff]  ;;  %v2410_v34 = vpack.c.bf16 %v853_v27, %v852_v26  ;;  %v822_v36 = vld [vmem:[%s3709_s1 + $0xe0] sm:$0xff] }
  0x3b   : > { %v836_v33 = vld [vmem:[%s3709_s1 + $0x150] sm:$0xff]  ;;  %v837_v35 = vld [vmem:[%s3709_s1 + $0x158] sm:$0xff]  ;;  %v823_v37 = vld [vmem:[%s3709_s1 + $0xe8] sm:$0xff]  ;;  %v2380_v40 = vpack.c.bf16 %v805_v32, %v804_v31 }
  0x3c   : > { %2373 = vmatpush3.bf16.msra.mxu0 %v2372_v16  ;;  %v854_v38 = vld [vmem:[%s3709_s1 + $0x1e0] sm:$0xff]  ;;  %v855_v39 = vld [vmem:[%s3709_s1 + $0x1e8] sm:$0xff]  ;;  %v2412_v43 = vpack.c.bf16 %v837_v35, %v836_v33  ;;  %v2382_v44 = vpack.c.bf16 %v823_v37, %v822_v36  ;;  %v3014_v47 = vld [vmem:[#allocation2 + $0x18] sm:$0xff] }
  0x3d   : > { %2405 = vmatpush3.bf16.msra.mxu1 %v2404_v17  ;;  %2375 = vmatprep.subr.bf16.mxu0 %v2374_v18  ;;  %v806_v41 = vld [vmem:[%s3709_s1 + $0x60] sm:$0xff]  ;;  %v807_v42 = vld [vmem:[%s3709_s1 + $0x68] sm:$0xff]  ;;  %v2414_v48 = vpack.c.bf16 %v855_v39, %v854_v38  ;;  %v824_v50 = vld [vmem:[%s3709_s1 + $0xf0] sm:$0xff] }
  0x3e   : > { %2407 = vmatprep.subr.bf16.mxu1 %v2406_v22  ;;  %v838_v45 = vld [vmem:[%s3709_s1 + $0x160] sm:$0xff]  ;;  %v839_v49 = vld [vmem:[%s3709_s1 + $0x168] sm:$0xff]  ;;  %v825_v51 = vld [vmem:[%s3709_s1 + $0xf8] sm:$0xff]  ;;  %1147 = vmatprep.mubr.f32.mxu1 %v3014_v47  ;;  %v2384_v54 = vpack.c.bf16 %v807_v42, %v806_v41 }
  0x3f   : > { %v392_v46 = vld [vmem:[#allocation2 + $0x1] sm:$0xff]  ;;  %v856_v52 = vld [vmem:[%s3709_s1 + $0x1f0] sm:$0xff]  ;;  %v857_v53 = vld [vmem:[%s3709_s1 + $0x1f8] sm:$0xff]  ;;  %v2416_v55 = vpack.c.bf16 %v839_v49, %v838_v45  ;;  %v2386_v56 = vpack.c.bf16 %v825_v51, %v824_v50 }
  0x40   : > { %2377 = vmatpush3.bf16.msra.mxu0 %v2376_v28  ;;  %1002 = vmatprep.mubr.f32.mxu0 %v392_v46  ;;  %v808_v57 = vld [vmem:[%s3709_s1 + $0x70] sm:$0xff]  ;;  %v809_v58 = vld [vmem:[%s3709_s1 + $0x78] sm:$0xff]  ;;  %v2418_v60 = vpack.c.bf16 %v857_v53, %v856_v52  ;;  %v874_v62 = vld [vmem:[%s3709_s1 + $0x280] sm:$0xff] }
  0x41   : > { %2409 = vmatpush3.bf16.msra.mxu1 %v2408_v29  ;;  %2379 = vmatprep.subr.bf16.mxu0 %v2378_v30  ;;  %v840_v59 = vld [vmem:[%s3709_s1 + $0x170] sm:$0xff]  ;;  %v841_v61 = vld [vmem:[%s3709_s1 + $0x178] sm:$0xff]  ;;  %v875_v63 = vld [vmem:[%s3709_s1 + $0x288] sm:$0xff]  ;;  %v2388_v2 = vpack.c.bf16 %v809_v58, %v808_v57 }
  0x42   : > { %2411 = vmatprep.subr.bf16.mxu1 %v2410_v34  ;;  %v906_v0 = vld [vmem:[%s3709_s1 + $0x380] sm:$0xff]  ;;  %v907_v1 = vld [vmem:[%s3709_s1 + $0x388] sm:$0xff]  ;;  %v2420_v3 = vpack.c.bf16 %v841_v61, %v840_v59  ;;  %v2422_v4 = vpack.c.bf16 %v875_v63, %v874_v62  ;;  %v876_v10 = vld [vmem:[%s3709_s1 + $0x290] sm:$0xff] }
  0x43   : > { %v858_v5 = vld [vmem:[%s3709_s1 + $0x200] sm:$0xff]  ;;  %v859_v6 = vld [vmem:[%s3709_s1 + $0x208] sm:$0xff]  ;;  %v2454_v7 = vpack.c.bf16 %v907_v1, %v906_v0  ;;  %v877_v11 = vld [vmem:[%s3709_s1 + $0x298] sm:$0xff] }
  0x44   : > { %2381 = vmatpush3.bf16.msra.mxu0 %v2380_v40  ;;  %v890_v8 = vld [vmem:[%s3709_s1 + $0x300] sm:$0xff]  ;;  %v891_v9 = vld [vmem:[%s3709_s1 + $0x308] sm:$0xff]  ;;  %v2424_v13 = vpack.c.bf16 %v859_v6, %v858_v5  ;;  %v908_v14 = vld [vmem:[%s3709_s1 + $0x390] sm:$0xff]  ;;  %v2426_v20 = vpack.c.bf16 %v877_v11, %v876_v10 }
  0x45   : > { %2413 = vmatpush3.bf16.msra.mxu1 %v2412_v43  ;;  %2383 = vmatprep.subr.bf16.mxu0 %v2382_v44  ;;  %v360_v12 = vld [vmem:[#allocation2] sm:$0xff]  ;;  %v909_v15 = vld [vmem:[%s3709_s1 + $0x398] sm:$0xff]  ;;  %v2456_v17 = vpack.c.bf16 %v891_v9, %v890_v8  ;;  %v393_v18 = vld [vmem:[#allocation2 + $0x9] sm:$0xff] }
  0x46   : > { %2415 = vmatprep.subr.bf16.mxu1 %v2414_v48  ;;  %v424_v16 = vld [vmem:[#allocation2 + $0x2] sm:$0xff]  ;;  %v860_v21 = vld [vmem:[%s3709_s1 + $0x210] sm:$0xff]  ;;  %v861_v22 = vld [vmem:[%s3709_s1 + $0x218] sm:$0xff]  ;;  %v2458_v24 = vpack.c.bf16 %v909_v15, %v908_v14 }
  0x47   : > { %v3080_v19 = vld [vmem:[#allocation2 + $0x20] sm:$0xff]  ;;  %v892_v23 = vld [vmem:[%s3709_s1 + $0x310] sm:$0xff]  ;;  %v893_v25 = vld [vmem:[%s3709_s1 + $0x318] sm:$0xff]  ;;  %v2428_v34 = vpack.c.bf16 %v861_v22, %v860_v21 }
  0x48   : > { %2385 = vmatpush3.bf16.msra.mxu0 %v2384_v54  ;;  %v878_v26 = vld [vmem:[%s3709_s1 + $0x2a0] sm:$0xff]  ;;  %v879_v27 = vld [vmem:[%s3709_s1 + $0x2a8] sm:$0xff]  ;;  %v3108_v33 = vld [vmem:[#allocation2 + $0x30] sm:$0xff]  ;;  %v2460_v35 = vpack.c.bf16 %v893_v25, %v892_v23 }
  0x49   : > { %2417 = vmatpush3.bf16.msra.mxu1 %v2416_v55  ;;  %2387 = vmatprep.subr.bf16.mxu0 %v2386_v56  ;;  %v361_v28 = vld [vmem:[#allocation2 + $0x8] sm:$0xff]  ;;  %v910_v29 = vld [vmem:[%s3709_s1 + $0x3a0] sm:$0xff]  ;;  %v2430_v36 = vpack.c.bf16 %v879_v27, %v878_v26  ;;  %v880_v42 = vld [vmem:[%s3709_s1 + $0x2b0] sm:$0xff] }
  0x4a   : > { %2419 = vmatprep.subr.bf16.mxu1 %v2418_v60  ;;  %v911_v30 = vld [vmem:[%s3709_s1 + $0x3a8] sm:$0xff]  ;;  %v3106_v32 = vld [vmem:[#allocation2 + $0x19] sm:$0xff]  ;;  %v912_v44 = vld [vmem:[%s3709_s1 + $0x3b0] sm:$0xff] }
  0x4b   : > { %v425_v31 = vld [vmem:[#allocation2 + $0xa] sm:$0xff]  ;;  %v862_v37 = vld [vmem:[%s3709_s1 + $0x220] sm:$0xff]  ;;  %v2462_v40 = vpack.c.bf16 %v911_v30, %v910_v29  ;;  %v881_v43 = vld [vmem:[%s3709_s1 + $0x2b8] sm:$0xff] }
  0x4c   : > { %2389 = vmatpush3.bf16.msra.mxu0 %v2388_v2  ;;  %v863_v38 = vld [vmem:[%s3709_s1 + $0x228] sm:$0xff]  ;;  %v894_v39 = vld [vmem:[%s3709_s1 + $0x320] sm:$0xff]  ;;  %v913_v45 = vld [vmem:[%s3709_s1 + $0x3b8] sm:$0xff]  ;;  %v2434_v52 = vpack.c.bf16 %v881_v43, %v880_v42 }
  0x4d   : > { %2421 = vmatpush3.bf16.msra.mxu1 %v2420_v3  ;;  %2423 = vmatprep.subr.bf16.mxu0 %v2422_v4  ;;  %v895_v41 = vld [vmem:[%s3709_s1 + $0x328] sm:$0xff]  ;;  %v3137_v46 = vld [vmem:[#allocation2 + $0x1a] sm:$0xff]  ;;  %v2432_v50 = vpack.c.bf16 %v863_v38, %v862_v37  ;;  %v864_v53 = vld [vmem:[%s3709_s1 + $0x230] sm:$0xff]  ;;  %v2466_v56 = vpack.c.bf16 %v913_v45, %v912_v44 }
  0x4e   : > { %2455 = vmatprep.subr.bf16.mxu1 %v2454_v7  ;;  %v3139_v48 = vld [vmem:[#allocation2 + $0x21] sm:$0xff]  ;;  %v3141_v49 = vld [vmem:[#allocation2 + $0x38] sm:$0xff]  ;;  %v2464_v51 = vpack.c.bf16 %v895_v41, %v894_v39  ;;  %v896_v55 = vld [vmem:[%s3709_s1 + $0x330] sm:$0xff] }
  0x4f   : > { %1003 = vmatmul.mubr.f32.vlgmr.msra.gmra.mrb[0].mxu0 %v360_v12  ;;  %v865_v54 = vld [vmem:[%s3709_s1 + $0x238] sm:$0xff]  ;;  %v882_v58 = vld [vmem:[%s3709_s1 + $0x2c0] sm:$0xff]  ;;  %v883_v59 = vld [vmem:[%s3709_s1 + $0x2c8] sm:$0xff] }
  0x50   : > { %1148 = vmatmul.mubr.f32.vlgmr.msra.gmra.mrb[0].mxu1 %v424_v16  ;;  %2425 = vmatpush3.bf16.msra.mxu0 %v2424_v13  ;;  %v897_v57 = vld [vmem:[%s3709_s1 + $0x338] sm:$0xff]  ;;  %v915_v60 = vld [vmem:[%s3709_s1 + $0x3c8] sm:$0xff]  ;;  %v2436_v0 = vpack.c.bf16 %v865_v54, %v864_v53  ;;  %v2438_v2 = vpack.c.bf16 %v883_v59, %v882_v58  ;;  %v866_v3 = vld [vmem:[%s3709_s1 + $0x240] sm:$0xff] }
  0x51   : > { %2457 = vmatpush3.bf16.msra.mxu1 %v2456_v17  ;;  %1007 = vmatprep.mubr.f32.mxu0 %v393_v18  ;;  %v3171_v61 = vld [vmem:[#allocation2 + $0x22] sm:$0xff]  ;;  %v3173_v62 = vld [vmem:[#allocation2 + $0x31] sm:$0xff]  ;;  %v2468_v1 = vpack.c.bf16 %v897_v57, %v896_v55  ;;  %v3207_v13 = vld [vmem:[#allocation2 + $0x39] sm:$0xff] }
  0x52   : > { %1152 = vmatprep.mubr.f32.mxu1 %v3080_v19  ;;  %2427 = vmatprep.subr.bf16.mxu0 %v2426_v20  ;;  %v3175_v63 = vld [vmem:[#allocation2 + $0x48] sm:$0xff]  ;;  %v898_v5 = vld [vmem:[%s3709_s1 + $0x340] sm:$0xff]  ;;  %v884_v8 = vld [vmem:[%s3709_s1 + $0x2d0] sm:$0xff] }
  0x53   : > { %1008 = vmatmul.mubr.f32.gmra.mrb[2].mxu0 %v361_v28  ;;  %2459 = vmatprep.subr.bf16.mxu1 %v2458_v24  ;;  %v867_v4 = vld [vmem:[%s3709_s1 + $0x248] sm:$0xff]  ;;  %v885_v9 = vld [vmem:[%s3709_s1 + $0x2d8] sm:$0xff]  ;;  %v916_v10 = vld [vmem:[%s3709_s1 + $0x3d0] sm:$0xff] }
  0x54   : > { %1153 = vmatmul.mubr.f32.gmra.mrb[2].mxu1 %v425_v31  ;;  %1012 = vmatprep.mubr.f32.mxu0 %v3106_v32  ;;  %v899_v7 = vld [vmem:[%s3709_s1 + $0x348] sm:$0xff]  ;;  %v917_v11 = vld [vmem:[%s3709_s1 + $0x3d8] sm:$0xff]  ;;  %v3209_v14 = vld [vmem:[#allocation2 + $0x50] sm:$0xff]  ;;  %v2440_v15 = vpack.c.bf16 %v867_v4, %v866_v3  ;;  %v2442_v17 = vpack.c.bf16 %v885_v9, %v884_v8 }
  0x55   : > { %1157 = vmatprep.mubr.f32.mxu1 %v3108_v33  ;;  %2429 = vmatpush3.bf16.msra.mxu0 %v2428_v34  ;;  %v3205_v12 = vld [vmem:[#allocation2 + $0x32] sm:$0xff]  ;;  %v2472_v16 = vpack.c.bf16 %v899_v7, %v898_v5  ;;  %v2474_v21 = vpack.c.bf16 %v917_v11, %v916_v10  ;;  %v886_v23 = vld [vmem:[%s3709_s1 + $0x2e0] sm:$0xff]  ;;  %v887_v24 = vld [vmem:[%s3709_s1 + $0x2e8] sm:$0xff] }
  0x56   : > { %2461 = vmatpush3.bf16.msra.mxu1 %v2460_v35  ;;  %2431 = vmatprep.subr.bf16.mxu0 %v2430_v36  ;;  %v868_v18 = vld [vmem:[%s3709_s1 + $0x250] sm:$0xff]  ;;  %v901_v22 = vld [vmem:[%s3709_s1 + $0x358] sm:$0xff]  ;;  %v918_v25 = vld [vmem:[%s3709_s1 + $0x3e0] sm:$0xff]  ;;  %v2446_v34 = vpack.c.bf16 %v887_v24, %v886_v23 }
  0x57   : > { %1013 = vmatmul.mubr.f32.gmra.mrb[4].mxu0 %v3014_v47  ;;  %2463 = vmatprep.subr.bf16.mxu1 %v2462_v40  ;;  %v914_v47 = vld [vmem:[%s3709_s1 + $0x3c0] sm:$0xff]  ;;  %v900_v20 = vld [vmem:[%s3709_s1 + $0x350] sm:$0xff]  ;;  %v919_v26 = vld [vmem:[%s3709_s1 + $0x3e8] sm:$0xff] }
  0x58   : > { %1158 = vmatmul.mubr.f32.gmra.mrb[4].mxu1 %v3137_v46  ;;  %1017 = vmatprep.mubr.f32.mxu0 %v3139_v48  ;;  %v2470_v6 = vpack.c.bf16 %v915_v60, %v914_v47  ;;  %v3239_v27 = vld [vmem:[#allocation2 + $0x3a] sm:$0xff]  ;;  %v3241_v28 = vld [vmem:[#allocation2 + $0x49] sm:$0xff]  ;;  %v2476_v31 = vpack.c.bf16 %v901_v22, %v900_v20  ;;  %v2478_v37 = vpack.c.bf16 %v919_v26, %v918_v25  ;;  %v3275_v45 = vld [vmem:[#allocation2 + $0x51] sm:$0xff] }
  0x59   : > { %1162 = vmatprep.mubr.f32.mxu1 %v3141_v49  ;;  %2433 = vmatpush3.bf16.msra.mxu0 %v2432_v50  ;;  %v3243_v30 = vld [vmem:[#allocation2 + $0x60] sm:$0xff]  ;;  %v871_v36 = vld [vmem:[%s3709_s1 + $0x268] sm:$0xff]  ;;  %v888_v40 = vld [vmem:[%s3709_s1 + $0x2f0] sm:$0xff] }
  0x5a   : > { %2465 = vmatpush3.bf16.msra.mxu1 %v2464_v51  ;;  %2435 = vmatprep.subr.bf16.mxu0 %v2434_v52  ;;  %v870_v35 = vld [vmem:[%s3709_s1 + $0x260] sm:$0xff]  ;;  %v903_v39 = vld [vmem:[%s3709_s1 + $0x368] sm:$0xff]  ;;  %v889_v41 = vld [vmem:[%s3709_s1 + $0x2f8] sm:$0xff] }
  0x5b   : > { %1018 = vmatmul.mubr.f32.gmra.mrb[6].mxu0 %v3080_v19  ;;  %2467 = vmatprep.subr.bf16.mxu1 %v2466_v56  ;;  %v869_v19 = vld [vmem:[%s3709_s1 + $0x258] sm:$0xff]  ;;  %v902_v38 = vld [vmem:[%s3709_s1 + $0x360] sm:$0xff]  ;;  %v920_v42 = vld [vmem:[%s3709_s1 + $0x3f0] sm:$0xff]  ;;  %v2448_v51 = vpack.c.bf16 %v871_v36, %v870_v35  ;;  %v2450_v53 = vpack.c.bf16 %v889_v41, %v888_v40 }
  0x5c   : > { %1163 = vmatmul.mubr.f32.gmra.mrb[6].mxu1 %v3171_v61  ;;  %1022 = vmatprep.mubr.f32.mxu0 %v3173_v62  ;;  %v2444_v29 = vpack.c.bf16 %v869_v19, %v868_v18  ;;  %v921_v43 = vld [vmem:[%s3709_s1 + $0x3f8] sm:$0xff]  ;;  %v3273_v44 = vld [vmem:[#allocation2 + $0x4a] sm:$0xff]  ;;  %v2480_v52 = vpack.c.bf16 %v903_v39, %v902_v38  ;;  %v922_v59 = vld [vmem:[%s3709_s1 + $0x400] sm:$0xff] }
  0x5d   : > { %1167 = vmatprep.mubr.f32.mxu1 %v3175_v63  ;;  %2437 = vmatpush3.bf16.msra.mxu0 %v2436_v0  ;;  %v3277_v50 = vld [vmem:[#allocation2 + $0x68] sm:$0xff]  ;;  %v872_v54 = vld [vmem:[%s3709_s1 + $0x270] sm:$0xff]  ;;  %v873_v55 = vld [vmem:[%s3709_s1 + $0x278] sm:$0xff]  ;;  %v2482_v57 = vpack.c.bf16 %v921_v43, %v920_v42 }
  0x5e   : > { %2469 = vmatpush3.bf16.msra.mxu1 %v2468_v1  ;;  %2439 = vmatprep.subr.bf16.mxu0 %v2438_v2  ;;  %v904_v56 = vld [vmem:[%s3709_s1 + $0x370] sm:$0xff]  ;;  %v905_v58 = vld [vmem:[%s3709_s1 + $0x378] sm:$0xff]  ;;  %v923_v47 = vld [vmem:[%s3709_s1 + $0x408] sm:$0xff]  ;;  %v2452_v1 = vpack.c.bf16 %v873_v55, %v872_v54 }
  0x5f   : > { %1023 = vmatmul.mubr.f32.gmra.mrb[8].mxu0 %v3108_v33  ;;  %2471 = vmatprep.subr.bf16.mxu1 %v2470_v6  ;;  %v3301_v60 = vld [vmem:[#allocation2 + $0x52] sm:$0xff]  ;;  %v3303_v0 = vld [vmem:[#allocation2 + $0x61] sm:$0xff]  ;;  %v2484_v3 = vpack.c.bf16 %v905_v58, %v904_v56  ;;  %v3307_v4 = vpack.c.bf16 %v923_v47, %v922_v59  ;;  %v3315_v6 = vld [vmem:[#allocation2 + $0x69] sm:$0xff] }
  0x60   : > { %1168 = vmatmul.mubr.f32.gmra.mrb[8].mxu1 %v3205_v12  ;;  %1027 = vmatprep.mubr.f32.mxu0 %v3207_v13  ;;  %v3305_v2 = vld [vmem:[#allocation2 + $0x78] sm:$0xff]  ;;  %v3313_v5 = vld [vmem:[#allocation2 + $0x62] sm:$0xff]  ;;  %v3325_v8 = vld [vmem:[#allocation2 + $0x6a] sm:$0xff] }
  0x61   : > { %1172 = vmatprep.mubr.f32.mxu1 %v3209_v14  ;;  %2441 = vmatpush3.bf16.msra.mxu0 %v2440_v15  ;;  %v3317_v7 = vld [vmem:[#allocation2 + $0x80] sm:$0xff]  ;;  %v3329_v10 = vld [vmem:[#allocation2 + $0x90] sm:$0xff]  ;;  %v3349_v19 = vld [vmem:[#allocation2 + $0xa8] sm:$0xff] }
  0x62   : > { %2473 = vmatpush3.bf16.msra.mxu1 %v2472_v16  ;;  %2443 = vmatprep.subr.bf16.mxu0 %v2442_v17  ;;  %v3327_v9 = vld [vmem:[#allocation2 + $0x79] sm:$0xff]  ;;  %v3337_v15 = vld [vmem:[#allocation2 + $0x81] sm:$0xff]  ;;  %v3347_v18 = vld [vmem:[#allocation2 + $0x91] sm:$0xff] }
  0x63   : > { %1028 = vmatmul.mubr.f32.gmra.mrb[10].mxu0 %v3141_v49  ;;  %2475 = vmatprep.subr.bf16.mxu1 %v2474_v21  ;;  %v3335_v11 = vld [vmem:[#allocation2 + $0x7a] sm:$0xff]  ;;  %v3345_v17 = vld [vmem:[#allocation2 + $0x82] sm:$0xff]  ;;  %v3355_v20 = vld [vmem:[#allocation2 + $0x92] sm:$0xff] }
  0x64   : > { %1173 = vmatmul.mubr.f32.gmra.mrb[10].mxu1 %v3239_v27  ;;  %1032 = vmatprep.mubr.f32.mxu0 %v3241_v28  ;;  %v3339_v16 = vld [vmem:[#allocation2 + $0x98] sm:$0xff]  ;;  %v3359_v22 = vld [vmem:[#allocation2 + $0xb0] sm:$0xff]  ;;  %v3369_v25 = vld [vmem:[#allocation2 + $0xc0] sm:$0xff] }
  0x65   : > { %1177 = vmatprep.mubr.f32.mxu1 %v3243_v30  ;;  %2445 = vmatpush3.bf16.msra.mxu0 %v2444_v29  ;;  %v3357_v21 = vld [vmem:[#allocation2 + $0x99] sm:$0xff]  ;;  %v3367_v24 = vld [vmem:[#allocation2 + $0xa9] sm:$0xff]  ;;  %v3377_v29 = vld [vmem:[#allocation2 + $0xb1] sm:$0xff] }
  0x66   : > { %2477 = vmatpush3.bf16.msra.mxu1 %v2476_v31  ;;  %2447 = vmatprep.subr.bf16.mxu0 %v2446_v34  ;;  %v3365_v23 = vld [vmem:[#allocation2 + $0x9a] sm:$0xff]  ;;  %v3375_v26 = vld [vmem:[#allocation2 + $0xaa] sm:$0xff]  ;;  %v3385_v34 = vld [vmem:[#allocation2 + $0xb2] sm:$0xff] }
  0x67   : > { %1033 = vmatmul.mubr.f32.gmra.mrb[12].mxu0 %v3175_v63  ;;  %2479 = vmatprep.subr.bf16.mxu1 %v2478_v37  ;;  %v3379_v31 = vld [vmem:[#allocation2 + $0xc8] sm:$0xff]  ;;  %v924_v35 = vld [vmem:[%s3709_s1 + $0x410] sm:$0xff]  ;;  %v925_v36 = vld [vmem:[%s3709_s1 + $0x418] sm:$0xff] }
  0x68   : > { %1178 = vmatmul.mubr.f32.gmra.mrb[12].mxu1 %v3273_v44  ;;  %1037 = vmatprep.mubr.f32.mxu0 %v3275_v45  ;;  %v2490_v37 = vpack.c.bf16 %v925_v36, %v924_v35  ;;  %v926_v38 = vld [vmem:[%s3709_s1 + $0x420] sm:$0xff]  ;;  %v927_v39 = vld [vmem:[%s3709_s1 + $0x428] sm:$0xff]  ;;  %v933_v41 = vld [vmem:[%s3709_s1 + $0x458] sm:$0xff] }
  0x69   : > { %1182 = vmatprep.mubr.f32.mxu1 %v3277_v50  ;;  %2449 = vmatpush3.bf16.msra.mxu0 %v2448_v51  ;;  %v931_v40 = vld [vmem:[%s3709_s1 + $0x448] sm:$0xff]  ;;  %v937_v43 = vld [vmem:[%s3709_s1 + $0x478] sm:$0xff]  ;;  %v569_v56 = vld [vmem:[#allocation2 + $0xe0] sm:$0xff] }
  0x6a   : > { %2481 = vmatpush3.bf16.msra.mxu1 %v2480_v52  ;;  %2451 = vmatprep.subr.bf16.mxu0 %v2450_v53  ;;  %v935_v42 = vld [vmem:[%s3709_s1 + $0x468] sm:$0xff]  ;;  %v600_v52 = vld [vmem:[#allocation2 + $0xd9] sm:$0xff] }
  0x6b   : > { %1038 = vmatmul.mubr.f32.gmra.mrb[14].mxu0 %v3209_v14  ;;  %2483 = vmatprep.subr.bf16.mxu1 %v2482_v57  ;;  %v535_v51 = vld [vmem:[#allocation2 + $0xc2] sm:$0xff]  ;;  %v568_v53 = vld [vmem:[#allocation2 + $0xd8] sm:$0xff]  ;;  %v536_v54 = vld [vmem:[#allocation2 + $0xca] sm:$0xff] }
  0x6c   : > { %1183 = vmatmul.mubr.f32.gmra.mrb[14].mxu1 %v3301_v60  ;;  %1042 = vmatprep.mubr.f32.mxu0 %v3303_v0  ;;  %v601_v55 = vld [vmem:[#allocation2 + $0xe1] sm:$0xff] }
  0x6d   : > { %1187 = vmatprep.mubr.f32.mxu1 %v3305_v2  ;;  %2453 = vmatpush3.bf16.msra.mxu0 %v2452_v1  ;;  %v632_v57 = vld [vmem:[#allocation2 + $0xda] sm:$0xff] }
  0x6e   : > { %2485 = vmatpush3.bf16.msra.mxu1 %v2484_v3  ;;  %2487 = vmatprep.subr.bf16.mxu0 %v3307_v4 }
  0x6f   : > { %1043 = vmatmul.mubr.f32.gmra.mrb[16].mxu0 %v3243_v30  ;;  %2518 = vmatprep.subr.bf16.mxu1 %v3307_v4 }
  0x70   : > { %1188 = vmatmul.mubr.f32.gmra.mrb[16].mxu1 %v3313_v5  ;;  %1047 = vmatprep.mubr.f32.mxu0 %v3315_v6 }
  0x71   : > { %1192 = vmatprep.mubr.f32.mxu1 %v3317_v7 }
  0x73   : > { %1048 = vmatmul.mubr.f32.gmra.mrb[18].mxu0 %v3277_v50 }
  0x74   : > { %1193 = vmatmul.mubr.f32.gmra.mrb[18].mxu1 %v3325_v8  ;;  %1052 = vmatprep.mubr.f32.mxu0 %v3327_v9 }
  0x75   : > { %1197 = vmatprep.mubr.f32.mxu1 %v3329_v10 }
  0x77   : > { %1053 = vmatmul.mubr.f32.gmra.mrb[20].mxu0 %v3305_v2 }
  0x78   : > { %1198 = vmatmul.mubr.f32.gmra.mrb[20].mxu1 %v3335_v11  ;;  %1057 = vmatprep.mubr.f32.mxu0 %v3337_v15 }
  0x79   : > { %1202 = vmatprep.mubr.f32.mxu1 %v3339_v16 }
  0x7b   : > { %1058 = vmatmul.mubr.f32.gmra.mrb[22].mxu0 %v3317_v7 }
  0x7c   : > { %1203 = vmatmul.mubr.f32.gmra.mrb[22].mxu1 %v3345_v17  ;;  %1062 = vmatprep.mubr.f32.mxu0 %v3347_v18 }
  0x7d   : > { %1207 = vmatprep.mubr.f32.mxu1 %v3349_v19 }
  0x7f   : > { %1063 = vmatmul.mubr.f32.gmra.mrb[24].mxu0 %v3329_v10 }
  0x80   : > { %1208 = vmatmul.mubr.f32.gmra.mrb[24].mxu1 %v3355_v20  ;;  %1067 = vmatprep.mubr.f32.mxu0 %v3357_v21 }
  0x81   : > { %1212 = vmatprep.mubr.f32.mxu1 %v3359_v22 }
  0x83   : > { %1068 = vmatmul.mubr.f32.gmra.mrb[26].mxu0 %v3339_v16 }
  0x84   : > { %1213 = vmatmul.mubr.f32.gmra.mrb[26].mxu1 %v3365_v23  ;;  %1072 = vmatprep.mubr.f32.mxu0 %v3367_v24 }
  0x85   : > { %1217 = vmatprep.mubr.f32.mxu1 %v3369_v25 }
  0x87   : > { %1073 = vmatmul.mubr.f32.gmra.mrb[28].mxu0 %v3349_v19 }
  0x88   : > { %1218 = vmatmul.mubr.f32.gmra.mrb[28].mxu1 %v3375_v26  ;;  %1077 = vmatprep.mubr.f32.mxu0 %v3377_v29 }
  0x89   : > { %1222 = vmatprep.mubr.f32.mxu1 %v3379_v31 }
  0x8b   : > { %1078 = vmatmul.mubr.f32.gmra.mrb[30].mxu0 %v3359_v22 }
  0x8c   : > { %1223 = vmatmul.mubr.f32.gmra.mrb[30].mxu1 %v3385_v34  ;;  %1292 = vmatprep.mubr.f32.mxu0 %v3137_v46  ;;  %v928_v46 = vld [vmem:[%s3709_s1 + $0x430] sm:$0xff] }
  0x8d   : > { %1437 = vmatprep.mubr.f32.mxu1 %v3173_v62 }
  0x8f   : > { %1293 = vmatmul.mubr.f32.vlgmr.msra.gmra.mrb[32].mxu0 %v3106_v32  ;;  %v2494_v32 = vpack.c.bf16 %v927_v39, %v926_v38 }
  0x90   : > { %1438 = vmatmul.mubr.f32.vlgmr.msra.gmra.mrb[32].mxu1 %v3108_v33  ;;  %2489 = vmatpush3.bf16.msra.mxu0 %v3307_v4  ;;  %v929_v33 = vld [vmem:[%s3709_s1 + $0x438] sm:$0xff] }
  0x91   : > { %2526 = vmatpush3.bf16.msra.mxu1 %v3307_v4  ;;  %1297 = vmatprep.mubr.f32.mxu0 %v3171_v61  ;;  %v2498_v61 = vpack.c.bf16 %v929_v33, %v928_v46 }
  0x92   : > { %1442 = vmatprep.mubr.f32.mxu1 %v3207_v13  ;;  %2491 = vmatprep.subr.bf16.mxu0 %v2490_v37 }
  0x93   : > { %1298 = vmatmul.mubr.f32.gmra.mrb[34].mxu0 %v3139_v48  ;;  %2519 = vmatprep.subr.bf16.mxu1 %v2490_v37  ;;  %v930_v48 = vld [vmem:[%s3709_s1 + $0x440] sm:$0xff] }
  0x94   : > { %1443 = vmatmul.mubr.f32.gmra.mrb[34].mxu1 %v3141_v49  ;;  %1302 = vmatprep.mubr.f32.mxu0 %v3205_v12  ;;  %v2502_v49 = vpack.c.bf16 %v931_v40, %v930_v48 }
  0x95   : > { %1447 = vmatprep.mubr.f32.mxu1 %v3241_v28  ;;  %2493 = vmatpush3.bf16.msra.mxu0 %v2490_v37 }
  0x96   : > { %2527 = vmatpush3.bf16.msra.mxu1 %v2490_v37  ;;  %2495 = vmatprep.subr.bf16.mxu0 %v2494_v32 }
  0x97   : > { %1303 = vmatmul.mubr.f32.gmra.mrb[36].mxu0 %v3173_v62  ;;  %2520 = vmatprep.subr.bf16.mxu1 %v2494_v32  ;;  %v932_v62 = vld [vmem:[%s3709_s1 + $0x450] sm:$0xff] }
  0x98   : > { %1448 = vmatmul.mubr.f32.gmra.mrb[36].mxu1 %v3175_v63  ;;  %1307 = vmatprep.mubr.f32.mxu0 %v3239_v27  ;;  %v2506_v63 = vpack.c.bf16 %v933_v41, %v932_v62 }
  0x99   : > { %1452 = vmatprep.mubr.f32.mxu1 %v3275_v45  ;;  %2497 = vmatpush3.bf16.msra.mxu0 %v2494_v32 }
  0x9a   : > { %2528 = vmatpush3.bf16.msra.mxu1 %v2494_v32  ;;  %2499 = vmatprep.subr.bf16.mxu0 %v2498_v61 }
  0x9b   : > { %1308 = vmatmul.mubr.f32.gmra.mrb[38].mxu0 %v3207_v13  ;;  %2521 = vmatprep.subr.bf16.mxu1 %v2498_v61  ;;  %v934_v13 = vld [vmem:[%s3709_s1 + $0x460] sm:$0xff] }
  0x9c   : > { %1453 = vmatmul.mubr.f32.gmra.mrb[38].mxu1 %v3209_v14  ;;  %1312 = vmatprep.mubr.f32.mxu0 %v3273_v44  ;;  %v2510_v14 = vpack.c.bf16 %v935_v42, %v934_v13 }
  0x9d   : > { %1457 = vmatprep.mubr.f32.mxu1 %v3303_v0  ;;  %2501 = vmatpush3.bf16.msra.mxu0 %v2498_v61 }
  0x9e   : > { %2529 = vmatpush3.bf16.msra.mxu1 %v2498_v61  ;;  %2503 = vmatprep.subr.bf16.mxu0 %v2502_v49 }
  0x9f   : > { %1313 = vmatmul.mubr.f32.gmra.mrb[40].mxu0 %v3241_v28  ;;  %2522 = vmatprep.subr.bf16.mxu1 %v2502_v49  ;;  %v936_v28 = vld [vmem:[%s3709_s1 + $0x470] sm:$0xff] }
  0xa0   : > { %1458 = vmatmul.mubr.f32.gmra.mrb[40].mxu1 %v3243_v30  ;;  %1317 = vmatprep.mubr.f32.mxu0 %v3301_v60  ;;  %v2514_v30 = vpack.c.bf16 %v937_v43, %v936_v28 }
  0xa1   : > { %1462 = vmatprep.mubr.f32.mxu1 %v3315_v6  ;;  %2505 = vmatpush3.bf16.msra.mxu0 %v2502_v49 }
  0xa2   : > { %2530 = vmatpush3.bf16.msra.mxu1 %v2502_v49  ;;  %2507 = vmatprep.subr.bf16.mxu0 %v2506_v63 }
  0xa3   : > { %1318 = vmatmul.mubr.f32.gmra.mrb[42].mxu0 %v3275_v45  ;;  %2523 = vmatprep.subr.bf16.mxu1 %v2506_v63  ;;  %v598_v45 = vld [vmem:[#allocation2 + $0xc1] sm:$0xff] }
  0xa4   : > { %1463 = vmatmul.mubr.f32.gmra.mrb[42].mxu1 %v3277_v50  ;;  %1322 = vmatprep.mubr.f32.mxu0 %v3313_v5  ;;  %v599_v50 = vld [vmem:[#allocation2 + $0xc9] sm:$0xff] }
  0xa5   : > { %1467 = vmatprep.mubr.f32.mxu1 %v3327_v9  ;;  %2509 = vmatpush3.bf16.msra.mxu0 %v2506_v63 }
  0xa6   : > { %2531 = vmatpush3.bf16.msra.mxu1 %v2506_v63  ;;  %2511 = vmatprep.subr.bf16.mxu0 %v2510_v14 }
  0xa7   : > { %1323 = vmatmul.mubr.f32.gmra.mrb[44].mxu0 %v3303_v0  ;;  %2524 = vmatprep.subr.bf16.mxu1 %v2510_v14 }
  0xa8   : > { %1468 = vmatmul.mubr.f32.gmra.mrb[44].mxu1 %v3305_v2  ;;  %1327 = vmatprep.mubr.f32.mxu0 %v3325_v8 }
  0xa9   : > { %1472 = vmatprep.mubr.f32.mxu1 %v3337_v15  ;;  %2513 = vmatpush3.bf16.msra.mxu0 %v2510_v14 }
  0xaa   : > { %2532 = vmatpush3.bf16.msra.mxu1 %v2510_v14  ;;  %2515 = vmatprep.subr.bf16.mxu0 %v2514_v30 }
  0xab   : > { %1328 = vmatmul.mubr.f32.gmra.mrb[46].mxu0 %v3315_v6  ;;  %2525 = vmatprep.subr.bf16.mxu1 %v2514_v30 }
  0xac   : > { %1473 = vmatmul.mubr.f32.gmra.mrb[46].mxu1 %v3317_v7  ;;  %1332 = vmatprep.mubr.f32.mxu0 %v3335_v11 }
  0xad   : > { %1477 = vmatprep.mubr.f32.mxu1 %v3347_v18  ;;  %2517 = vmatpush3.bf16.msra.mxu0 %v2514_v30 }
  0xae   : > { %2533 = vmatpush3.bf16.msra.mxu1 %v2514_v30 }
  0xaf   : > { %1333 = vmatmul.mubr.f32.gmra.mrb[48].mxu0 %v3327_v9 }
  0xb0   : > { %1478 = vmatmul.mubr.f32.gmra.mrb[48].mxu1 %v3329_v10  ;;  %1337 = vmatprep.mubr.f32.mxu0 %v3345_v17 }
  0xb1   : > { %1482 = vmatprep.mubr.f32.mxu1 %v3357_v21 }
  0xb3   : > { %1338 = vmatmul.mubr.f32.gmra.mrb[50].mxu0 %v3337_v15 }
  0xb4   : > { %1483 = vmatmul.mubr.f32.gmra.mrb[50].mxu1 %v3339_v16  ;;  %1342 = vmatprep.mubr.f32.mxu0 %v3355_v20 }
  0xb5   : > { %1487 = vmatprep.mubr.f32.mxu1 %v3367_v24 }
  0xb7   : > { %1343 = vmatmul.mubr.f32.gmra.mrb[52].mxu0 %v3347_v18 }
  0xb8   : > { %1488 = vmatmul.mubr.f32.gmra.mrb[52].mxu1 %v3349_v19  ;;  %1347 = vmatprep.mubr.f32.mxu0 %v3365_v23 }
  0xb9   : > { %1492 = vmatprep.mubr.f32.mxu1 %v3377_v29 }
  0xbb   : > { %1348 = vmatmul.mubr.f32.gmra.mrb[54].mxu0 %v3357_v21 }
  0xbc   : > { %1493 = vmatmul.mubr.f32.gmra.mrb[54].mxu1 %v3359_v22  ;;  %1352 = vmatprep.mubr.f32.mxu0 %v3375_v26 }
  0xbd   : > { %1497 = vmatprep.mubr.f32.mxu1 %v598_v45 }
  0xbf   : > { %1353 = vmatmul.mubr.f32.gmra.mrb[56].mxu0 %v3367_v24 }
  0xc0   : > { %1498 = vmatmul.mubr.f32.gmra.mrb[56].mxu1 %v3369_v25  ;;  %1357 = vmatprep.mubr.f32.mxu0 %v3385_v34 }
  0xc1   : > { %1502 = vmatprep.mubr.f32.mxu1 %v599_v50 }
  0xc3   : > { %1358 = vmatmul.mubr.f32.gmra.mrb[58].mxu0 %v3377_v29 }
  0xc4   : > { %1503 = vmatmul.mubr.f32.gmra.mrb[58].mxu1 %v3379_v31  ;;  %1362 = vmatprep.mubr.f32.mxu0 %v535_v51 }
  0xc5   : > { %1507 = vmatprep.mubr.f32.mxu1 %v600_v52 }
  0xc7   : > { %1363 = vmatmul.mubr.f32.gmra.mrb[60].mxu0 %v598_v45 }
  0xc8   : > { %1508 = vmatmul.mubr.f32.gmra.mrb[60].mxu1 %v568_v53  ;;  %1367 = vmatprep.mubr.f32.mxu0 %v536_v54 }
  0xc9   : > { %1512 = vmatprep.mubr.f32.mxu1 %v601_v55 }
  0xcb   : > { %1368 = vmatmul.mubr.f32.gmra.mrb[62].mxu0 %v599_v50 }
  0xcc   : > { %1513 = vmatmul.mubr.f32.gmra.mrb[62].mxu1 %v569_v56  ;;  %2334 = vmatprep.mubr.f32.mxu0 %v3205_v12  ;;  %v633_v12 = vld [vmem:[#allocation2 + $0xe2] sm:$0xff] }
  0xcd   : > { %2346 = vmatprep.mubr.f32.mxu1 %v3355_v20 }
  0xcf   : > { %2335 = vmatmul.mubr.f32.vlgmr.msra.gmra.mrb[64].mxu0 %v3239_v27 }
  0xd0   : > { %2347 = vmatmul.mubr.f32.vlgmr.msra.gmra.mrb[64].mxu1 %v3365_v23  ;;  %2337 = vmatprep.mubr.f32.mxu0 %v3273_v44 }
  0xd1   : > { %2349 = vmatprep.mubr.f32.mxu1 %v3375_v26 }
  0xd3   : > { %2338 = vmatmul.mubr.f32.gmra.mrb[66].mxu0 %v3301_v60 }
  0xd4   : > { %2350 = vmatmul.mubr.f32.gmra.mrb[66].mxu1 %v3385_v34  ;;  %2340 = vmatprep.mubr.f32.mxu0 %v3313_v5 }
  0xd5   : > { %2352 = vmatprep.mubr.f32.mxu1 %v535_v51 }
  0xd7   : > { %2341 = vmatmul.mubr.f32.gmra.mrb[68].mxu0 %v3325_v8 }
  0xd8   : > { %2353 = vmatmul.mubr.f32.gmra.mrb[68].mxu1 %v536_v54  ;;  %2343 = vmatprep.mubr.f32.mxu0 %v3335_v11 }
  0xd9   : > { %2355 = vmatprep.mubr.f32.mxu1 %v632_v57 }
  0xdb   : > { %2344 = vmatmul.mubr.f32.gmra.mrb[70].mxu0 %v3345_v17 }
  0xdc   : > { %2356 = vmatmul.mubr.f32.gmra.mrb[70].mxu1 %v633_v12 }
 0x122   : > { %v1982_v27 = vpop.f32.mrb[0].mxu0 }
 0x123   : > { %v2062_v44 = vpop.f32.mrb[0].mxu1  ;;  %v1983_v58 = vpop.f32.mrb[1].mxu0 }
 0x124   : > { %v1984_v59 = vadd.f32 %v1983_v58, %v1982_v27  ;;  %v2063_v47 = vpop.f32.mrb[1].mxu1 }
 0x125   : > { %v2064_v60 = vadd.f32 %v2063_v47, %v2062_v44 }
 0x126   : > { %v1985_v0 = vpop.f32.mrb[2].mxu0 }
 0x127   : > { %v3499_v1 = vadd.f32 %v2064_v60, %v1984_v59  ;;  %v2065_v2 = vpop.f32.mrb[2].mxu1  ;;  %v1986_v3 = vpop.f32.mrb[3].mxu0 }
 0x128   : > { %v1987_v4 = vadd.f32 %v1986_v3, %v1985_v0  ;;  %v2066_v5 = vpop.f32.mrb[3].mxu1 }
 0x129   : > { %v2067_v6 = vadd.f32 %v2066_v5, %v2065_v2 }
 0x12a   : > { %v1988_v7 = vpop.f32.mrb[4].mxu0 }
 0x12b   : > { %v3501_v8 = vadd.f32 %v2067_v6, %v1987_v4  ;;  %v2068_v9 = vpop.f32.mrb[4].mxu1  ;;  %v1989_v10 = vpop.f32.mrb[5].mxu0 }
 0x12c   : > { %v1990_v11 = vadd.f32 %v1989_v10, %v1988_v7  ;;  %v2069_v15 = vpop.f32.mrb[5].mxu1 }
 0x12d   : > { %v2070_v16 = vadd.f32 %v2069_v15, %v2068_v9 }
 0x12e   : > { %v1991_v17 = vpop.f32.mrb[6].mxu0 }
 0x12f   : > { %v3503_v18 = vadd.f32 %v2070_v16, %v1990_v11  ;;  %v2071_v19 = vpop.f32.mrb[6].mxu1  ;;  %v1992_v20 = vpop.f32.mrb[7].mxu0 }
 0x130   : > { %v1993_v21 = vadd.f32 %v1992_v20, %v1991_v17  ;;  %v2072_v22 = vpop.f32.mrb[7].mxu1 }
 0x131   : > { %v2073_v23 = vadd.f32 %v2072_v22, %v2071_v19 }
 0x132   : > { %v1994_v24 = vpop.f32.mrb[8].mxu0 }
 0x133   : > { %v3505_v25 = vadd.f32 %v2073_v23, %v1993_v21  ;;  %v2074_v26 = vpop.f32.mrb[8].mxu1  ;;  %v1995_v29 = vpop.f32.mrb[9].mxu0 }
 0x134   : > { %v1996_v31 = vadd.f32 %v1995_v29, %v1994_v24  ;;  %v2075_v34 = vpop.f32.mrb[9].mxu1 }
 0x135   : > { %v2076_v35 = vadd.f32 %v2075_v34, %v2074_v26 }
 0x136   : > { %v1997_v36 = vpop.f32.mrb[10].mxu0 }
 0x137   : > { %v3507_v37 = vadd.f32 %v2076_v35, %v1996_v31  ;;  %v2077_v38 = vpop.f32.mrb[10].mxu1  ;;  %v1998_v39 = vpop.f32.mrb[11].mxu0 }
 0x138   : > { %v1999_v32 = vadd.f32 %v1998_v39, %v1997_v36  ;;  %v2078_v46 = vpop.f32.mrb[11].mxu1 }
 0x139   : > { %v2079_v33 = vadd.f32 %v2078_v46, %v2077_v38 }
 0x13a   : > { %v2000_v61 = vpop.f32.mrb[12].mxu0 }
 0x13b   : > { %v3509_v48 = vadd.f32 %v2079_v33, %v1999_v32  ;;  %v2080_v40 = vpop.f32.mrb[12].mxu1  ;;  %v2001_v49 = vpop.f32.mrb[13].mxu0 }
 0x13c   : > { %v2002_v62 = vadd.f32 %v2001_v49, %v2000_v61  ;;  %v2081_v41 = vpop.f32.mrb[13].mxu1 }
 0x13d   : > { %v2082_v63 = vadd.f32 %v2081_v41, %v2080_v40 }
 0x13e   : > { %v2003_v13 = vpop.f32.mrb[14].mxu0 }
 0x13f   : > { %v3511_v42 = vadd.f32 %v2082_v63, %v2002_v62  ;;  %v2083_v14 = vpop.f32.mrb[14].mxu1  ;;  %v2004_v28 = vpop.f32.mrb[15].mxu0 }
 0x140   : > { %v2005_v43 = vadd.f32 %v2004_v28, %v2003_v13  ;;  %v2084_v30 = vpop.f32.mrb[15].mxu1 }
 0x141   : > { %v2085_v45 = vadd.f32 %v2084_v30, %v2083_v14 }
 0x142   : > { %v2006_v50 = vpop.f32.mrb[16].mxu0 }
 0x143   : > { %v3513_v51 = vadd.f32 %v2085_v45, %v2005_v43  ;;  %v2086_v52 = vpop.f32.mrb[16].mxu1  ;;  %v2007_v53 = vpop.f32.mrb[17].mxu0 }
 0x144   : > { %v2008_v54 = vadd.f32 %v2007_v53, %v2006_v50  ;;  %v2087_v55 = vpop.f32.mrb[17].mxu1 }
 0x145   : > { %v2088_v56 = vadd.f32 %v2087_v55, %v2086_v52 }
 0x146   : > { %v2009_v57 = vpop.f32.mrb[18].mxu0 }
 0x147   : > { %v3515_v12 = vadd.f32 %v2088_v56, %v2008_v54  ;;  %v2089_v27 = vpop.f32.mrb[18].mxu1  ;;  %v2010_v44 = vpop.f32.mrb[19].mxu0 }
 0x148   : > { %v2011_v58 = vadd.f32 %v2010_v44, %v2009_v57  ;;  %v2090_v59 = vpop.f32.mrb[19].mxu1 }
 0x149   : > { %v2091_v47 = vadd.f32 %v2090_v59, %v2089_v27 }
 0x14a   : > { %v2012_v60 = vpop.f32.mrb[20].mxu0 }
 0x14b   : > { %v3517_v0 = vadd.f32 %v2091_v47, %v2011_v58  ;;  %v2092_v2 = vpop.f32.mrb[20].mxu1  ;;  %v2013_v3 = vpop.f32.mrb[21].mxu0 }
 0x14c   : > { %v2014_v4 = vadd.f32 %v2013_v3, %v2012_v60  ;;  %v2093_v5 = vpop.f32.mrb[21].mxu1 }
 0x14d   : > { %v2094_v6 = vadd.f32 %v2093_v5, %v2092_v2 }
 0x14e   : > { %v2015_v7 = vpop.f32.mrb[22].mxu0 }
 0x14f   : > { %v3519_v9 = vadd.f32 %v2094_v6, %v2014_v4  ;;  %v2095_v10 = vpop.f32.mrb[22].mxu1  ;;  %v2016_v11 = vpop.f32.mrb[23].mxu0 }
 0x150   : > { %v2017_v15 = vadd.f32 %v2016_v11, %v2015_v7  ;;  %v2096_v16 = vpop.f32.mrb[23].mxu1 }
 0x151   : > { %v2097_v17 = vadd.f32 %v2096_v16, %v2095_v10 }
 0x152   : > { %v2018_v19 = vpop.f32.mrb[24].mxu0 }
 0x153   : > { %v3521_v20 = vadd.f32 %v2097_v17, %v2017_v15  ;;  %v2098_v21 = vpop.f32.mrb[24].mxu1  ;;  %v2019_v22 = vpop.f32.mrb[25].mxu0 }
 0x154   : > { %v2020_v23 = vadd.f32 %v2019_v22, %v2018_v19  ;;  %v2099_v24 = vpop.f32.mrb[25].mxu1 }
 0x155   : > { %v2100_v26 = vadd.f32 %v2099_v24, %v2098_v21 }
 0x156   : > { %v2021_v29 = vpop.f32.mrb[26].mxu0 }
 0x157   : > { %v3523_v31 = vadd.f32 %v2100_v26, %v2020_v23  ;;  %v2101_v34 = vpop.f32.mrb[26].mxu1  ;;  %v2022_v35 = vpop.f32.mrb[27].mxu0 }
 0x158   : > { %v2023_v36 = vadd.f32 %v2022_v35, %v2021_v29  ;;  %v2102_v38 = vpop.f32.mrb[27].mxu1 }
 0x159   : > { %v2103_v39 = vadd.f32 %v2102_v38, %v2101_v34 }
 0x15a   : > { %v2024_v32 = vpop.f32.mrb[28].mxu0 }
 0x15b   : > { %v3525_v46 = vadd.f32 %v2103_v39, %v2023_v36  ;;  %v2104_v33 = vpop.f32.mrb[28].mxu1  ;;  %v2025_v61 = vpop.f32.mrb[29].mxu0 }
 0x15c   : > { %v2026_v40 = vadd.f32 %v2025_v61, %v2024_v32  ;;  %v2105_v49 = vpop.f32.mrb[29].mxu1 }
 0x15d   : > { %v2106_v62 = vadd.f32 %v2105_v49, %v2104_v33 }
 0x15e   : > { %v2027_v41 = vpop.f32.mrb[30].mxu0 }
 0x15f   : > { %v3527_v63 = vadd.f32 %v2106_v62, %v2026_v40  ;;  %v2107_v13 = vpop.f32.mrb[30].mxu1  ;;  %v2028_v14 = vpop.f32.mrb[31].mxu0 }
 0x160   : > { %v2029_v28 = vadd.f32 %v2028_v14, %v2027_v41  ;;  %v2108_v43 = vpop.f32.mrb[31].mxu1 }
 0x161   : > { %v2109_v30 = vadd.f32 %v2108_v43, %v2107_v13 }
 0x162   : > { %v2142_v45 = vpop.f32.mrb[32].mxu0 }
 0x163   : > { %v3529_v50 = vadd.f32 %v2109_v30, %v2029_v28  ;;  %v2222_v52 = vpop.f32.mrb[32].mxu1  ;;  %v2143_v53 = vpop.f32.mrb[33].mxu0 }
 0x164   : > { %v2144_v54 = vadd.f32 %v2143_v53, %v2142_v45  ;;  %v2223_v55 = vpop.f32.mrb[33].mxu1 }
 0x165   : > { %v2224_v56 = vadd.f32 %v2223_v55, %v2222_v52 }
 0x166   : > { %v1295_v57 = vadd.f32 %v2144_v54, %v3499_v1  ;;  %v2145_v27 = vpop.f32.mrb[34].mxu0 }
 0x167   : > { %v2225_v44 = vpop.f32.mrb[34].mxu1  ;;  %v2146_v58 = vpop.f32.mrb[35].mxu0 }
 0x168   : > { %v2147_v59 = vadd.f32 %v2146_v58, %v2145_v27  ;;  %v2226_v47 = vpop.f32.mrb[35].mxu1  ;;  %v3532_v60 = vadd.f32 %v2224_v56, %v1295_v57 }
 0x169   : > { %v2227_v2 = vadd.f32 %v2226_v47, %v2225_v44 }
 0x16a   : > { %v1300_v3 = vadd.f32 %v2147_v59, %v3501_v8  ;;  %v2148_v4 = vpop.f32.mrb[36].mxu0 }
 0x16b   : > { %v2228_v5 = vpop.f32.mrb[36].mxu1  ;;  %v2149_v6 = vpop.f32.mrb[37].mxu0 }
 0x16c   : > { %v2150_v7 = vadd.f32 %v2149_v6, %v2148_v4  ;;  %v2229_v10 = vpop.f32.mrb[37].mxu1  ;;  %v3535_v11 = vadd.f32 %v2227_v2, %v1300_v3 }
 0x16d   : > { %v2230_v15 = vadd.f32 %v2229_v10, %v2228_v5 }
 0x16e   : > { %v1305_v1 = vadd.f32 %v2150_v7, %v3503_v18  ;;  %v2151_v16 = vpop.f32.mrb[38].mxu0 }
 0x16f   : > { %v2231_v17 = vpop.f32.mrb[38].mxu1  ;;  %v2152_v19 = vpop.f32.mrb[39].mxu0 }
 0x170   : > { %v2153_v21 = vadd.f32 %v2152_v19, %v2151_v16  ;;  %v2232_v22 = vpop.f32.mrb[39].mxu1  ;;  %v3538_v23 = vadd.f32 %v2230_v15, %v1305_v1 }
 0x171   : > { %v2233_v24 = vadd.f32 %v2232_v22, %v2231_v17 }
 0x172   : > { %v1310_v8 = vadd.f32 %v2153_v21, %v3505_v25  ;;  %v2154_v26 = vpop.f32.mrb[40].mxu0 }
 0x173   : > { %v2234_v29 = vpop.f32.mrb[40].mxu1  ;;  %v2155_v34 = vpop.f32.mrb[41].mxu0 }
 0x174   : > { %v2156_v35 = vadd.f32 %v2155_v34, %v2154_v26  ;;  %v2235_v36 = vpop.f32.mrb[41].mxu1  ;;  %v3541_v38 = vadd.f32 %v2233_v24, %v1310_v8 }
 0x175   : > { %v2236_v39 = vadd.f32 %v2235_v36, %v2234_v29 }
 0x176   : > { %v1315_v18 = vadd.f32 %v2156_v35, %v3507_v37  ;;  %v2157_v32 = vpop.f32.mrb[42].mxu0 }
 0x177   : > { %v2237_v33 = vpop.f32.mrb[42].mxu1  ;;  %v2158_v61 = vpop.f32.mrb[43].mxu0 }
 0x178   : > { %v2159_v40 = vadd.f32 %v2158_v61, %v2157_v32  ;;  %v2238_v49 = vpop.f32.mrb[43].mxu1  ;;  %v3544_v62 = vadd.f32 %v2236_v39, %v1315_v18 }
 0x179   : > { %v2239_v41 = vadd.f32 %v2238_v49, %v2237_v33 }
 0x17a   : > { %v1320_v25 = vadd.f32 %v2159_v40, %v3509_v48  ;;  %v2160_v13 = vpop.f32.mrb[44].mxu0 }
 0x17b   : > { %v2240_v14 = vpop.f32.mrb[44].mxu1  ;;  %v2161_v28 = vpop.f32.mrb[45].mxu0 }
 0x17c   : > { %v2162_v43 = vadd.f32 %v2161_v28, %v2160_v13  ;;  %v2241_v30 = vpop.f32.mrb[45].mxu1  ;;  %v3547_v45 = vadd.f32 %v2239_v41, %v1320_v25 }
 0x17d   : > { %v2242_v52 = vadd.f32 %v2241_v30, %v2240_v14 }
 0x17e   : > { %v1325_v37 = vadd.f32 %v2162_v43, %v3511_v42  ;;  %v2163_v53 = vpop.f32.mrb[46].mxu0 }
 0x17f   : > { %v2243_v54 = vpop.f32.mrb[46].mxu1  ;;  %v2164_v55 = vpop.f32.mrb[47].mxu0 }
 0x180   : > { %v2165_v56 = vadd.f32 %v2164_v55, %v2163_v53  ;;  %v2244_v57 = vpop.f32.mrb[47].mxu1  ;;  %v3550_v27 = vadd.f32 %v2242_v52, %v1325_v37 }
 0x181   : > { %v2245_v44 = vadd.f32 %v2244_v57, %v2243_v54 }
 0x182   : > { %v1330_v48 = vadd.f32 %v2165_v56, %v3513_v51  ;;  %v2166_v58 = vpop.f32.mrb[48].mxu0 }
 0x183   : > { %v2246_v59 = vpop.f32.mrb[48].mxu1  ;;  %v2167_v47 = vpop.f32.mrb[49].mxu0 }
 0x184   : > { %v2168_v2 = vadd.f32 %v2167_v47, %v2166_v58  ;;  %v2247_v3 = vpop.f32.mrb[49].mxu1  ;;  %v3553_v4 = vadd.f32 %v2245_v44, %v1330_v48 }
 0x185   : > { %v2248_v5 = vadd.f32 %v2247_v3, %v2246_v59 }
 0x186   : > { %v1335_v42 = vadd.f32 %v2168_v2, %v3515_v12  ;;  %v2169_v6 = vpop.f32.mrb[50].mxu0 }
 0x187   : > { %v2249_v7 = vpop.f32.mrb[50].mxu1  ;;  %v2170_v10 = vpop.f32.mrb[51].mxu0 }
 0x188   : > { %v2171_v15 = vadd.f32 %v2170_v10, %v2169_v6  ;;  %v2250_v1 = vpop.f32.mrb[51].mxu1  ;;  %v1480_v16 = vadd.f32 %v2248_v5, %v1335_v42 }
 0x189   : > { %v2251_v17 = vadd.f32 %v2250_v1, %v2249_v7 }
 0x18a   : > { %v1340_v19 = vadd.f32 %v2171_v15, %v3517_v0  ;;  %v2172_v51 = vpop.f32.mrb[52].mxu0  ;;  %v3574_v15 = vld [vmem:[%s3710_s2] ss:$0 sm:$0xff] }
 0x18b   : > { %v2252_v21 = vpop.f32.mrb[52].mxu1  ;;  %v2173_v22 = vpop.f32.mrb[53].mxu0 }
 0x18c   : > { %v2174_v24 = vadd.f32 %v2173_v22, %v2172_v51  ;;  %v2253_v8 = vpop.f32.mrb[53].mxu1  ;;  %v1485_v26 = vadd.f32 %v2251_v17, %v1340_v19  ;;  %v3580_v19 = vld [vmem:[%s3711_s3] ss:$0 sm:$0xff] }
 0x18d   : > { %v2254_v29 = vadd.f32 %v2253_v8, %v2252_v21 }
 0x18e   : > { %v1345_v34 = vadd.f32 %v2174_v24, %v3519_v9  ;;  %v2175_v35 = vpop.f32.mrb[54].mxu0 }
 0x18f   : > { %v2255_v12 = vpop.f32.mrb[54].mxu1  ;;  %v2176_v36 = vpop.f32.mrb[55].mxu0 }
 0x190   : > { %v2177_v39 = vadd.f32 %v2176_v36, %v2175_v35  ;;  %v2256_v18 = vpop.f32.mrb[55].mxu1  ;;  %v3558_v32 = vadd.f32 %v2254_v29, %v1345_v34 }
 0x191   : > { %v2257_v33 = vadd.f32 %v2256_v18, %v2255_v12 }
 0x192   : > { %v1350_v61 = vadd.f32 %v2177_v39, %v3521_v20  ;;  %v2178_v0 = vpop.f32.mrb[56].mxu0 }
 0x193   : > { %v2258_v40 = vpop.f32.mrb[56].mxu1  ;;  %v2179_v49 = vpop.f32.mrb[57].mxu0 }
 0x194   : > { %v2180_v41 = vadd.f32 %v2179_v49, %v2178_v0  ;;  %v2259_v25 = vpop.f32.mrb[57].mxu1  ;;  %v1495_v13 = vadd.f32 %v2257_v33, %v1350_v61 }
 0x195   : > { %v2260_v14 = vadd.f32 %v2259_v25, %v2258_v40 }
 0x196   : > { %v1355_v28 = vadd.f32 %v2180_v41, %v3523_v31  ;;  %v2181_v9 = vpop.f32.mrb[58].mxu0 }
 0x197   : > { %v2261_v43 = vpop.f32.mrb[58].mxu1  ;;  %v2182_v30 = vpop.f32.mrb[59].mxu0 }
 0x198   : > { %v2183_v52 = vadd.f32 %v2182_v30, %v2181_v9  ;;  %v2262_v37 = vpop.f32.mrb[59].mxu1  ;;  %v3562_v53 = vadd.f32 %v2260_v14, %v1355_v28 }
 0x199   : > { %v2263_v54 = vadd.f32 %v2262_v37, %v2261_v43 }
 0x19a   : > { %v1360_v55 = vadd.f32 %v2183_v52, %v3525_v46  ;;  %v2184_v20 = vpop.f32.mrb[60].mxu0 }
 0x19b   : > { %v2264_v56 = vpop.f32.mrb[60].mxu1  ;;  %v2185_v57 = vpop.f32.mrb[61].mxu0 }
 0x19c   : > { %v2186_v44 = vadd.f32 %v2185_v57, %v2184_v20  ;;  %v2265_v48 = vpop.f32.mrb[61].mxu1  ;;  %v3565_v58 = vadd.f32 %v2263_v54, %v1360_v55 }
 0x19d   : > { %v2266_v59 = vadd.f32 %v2265_v48, %v2264_v56 }
 0x19e   : > { %v1365_v31 = vadd.f32 %v2186_v44, %v3527_v63  ;;  %v2187_v47 = vpop.f32.mrb[62].mxu0 }
 0x19f   : > { %v2267_v2 = vpop.f32.mrb[62].mxu1  ;;  %v2188_v3 = vpop.f32.mrb[63].mxu0 }
 0x1a0   : > { %v2189_v5 = vadd.f32 %v2188_v3, %v2187_v47  ;;  %v2268_v42 = vpop.f32.mrb[63].mxu1  ;;  %v3568_v6 = vadd.f32 %v2266_v59, %v1365_v31 }
 0x1a1   : > { %v2269_v7 = vadd.f32 %v2268_v42, %v2267_v2 }
 0x1a2   : > { %v1370_v46 = vadd.f32 %v2189_v5, %v3529_v50  ;;  %v2336_v10 = vpop.f32.mrb[64].mxu0 }
 0x1a3   : > { %v1590_v1 = vadd.f32 %v2336_v10, %v3535_v11  ;;  %v2348_v17 = vpop.f32.mrb[64].mxu1  ;;  %v1584_v63 = vpop.f32.mrb[65].mxu0 }
 0x1a4   : > { %v1630_v51 = vadd.f32 %v2348_v17, %v1485_v26  ;;  %v1585_v21 = vadd.f32 %v1584_v63, %v3532_v60  ;;  %v1624_v22 = vpop.f32.mrb[65].mxu1  ;;  %v3583_v50 = vadd.f32 %v2269_v7, %v1370_v46 }
 0x1a5   : > { %v1671_v24 = vmul.f32 %v3574_v15, %v1590_v1  ;;  %v1625_v8 = vadd.f32 %v1624_v22, %v1480_v16 }
 0x1a6   : > { %v1679_v29 = vmul.f32 %v3574_v15, %v1630_v51  ;;  %v1670_v11 = vmul.f32 %v3574_v15, %v1585_v21  ;;  %v2339_v34 = vpop.f32.mrb[66].mxu0 }
 0x1a7   : > { %v1694_v35 = vadd.f32 %v3580_v19, %v1671_v24  ;;  %v1678_v12 = vmul.f32 %v3574_v15, %v1625_v8  ;;  %v1600_v36 = vadd.f32 %v2339_v34, %v3541_v38  ;;  %v2351_v26 = vpop.f32.mrb[66].mxu1  ;;  %v1594_v39 = vpop.f32.mrb[67].mxu0 }
 0x1a8   : > { %v1702_v60 = vadd.f32 %v3580_v19, %v1679_v29  ;;  %v1693_v18 = vadd.f32 %v3580_v19, %v1670_v11  ;;  %v1640_v33 = vadd.f32 %v2351_v26, %v1495_v13  ;;  %v1595_v16 = vadd.f32 %v1594_v39, %v3538_v23  ;;  %v1634_v61 = vpop.f32.mrb[67].mxu1 }
 0x1a9   : > { %vm1710_vm0 = vcmp.gt.f32.partialorder %v1694_v35, 0.0  ;;  %v1726_v0 = vmul.f32 0.1, %v1694_v35  ;;  %v1701_v40 = vadd.f32 %v3580_v19, %v1678_v12  ;;  %v1673_v49 = vmul.f32 %v3574_v15, %v1600_v36 }
 0x1aa   : > { %vm1718_vm1 = vcmp.gt.f32.partialorder %v1702_v60, 0.0  ;;  %v1734_v41 = vmul.f32 0.1, %v1702_v60  ;;  %vm1709_vm2 = vcmp.gt.f32.partialorder %v1693_v18, 0.0  ;;  %v1725_v38 = vmul.f32 0.1, %v1693_v18 }
 0x1ab   : > { %v1742_v25 = vsel %vm1710_vm0, %v1694_v35, %v1726_v0  ;;  %vm1717_vm3 = vcmp.gt.f32.partialorder %v1701_v40, 0.0  ;;  %v1733_v14 = vmul.f32 0.1, %v1701_v40  ;;  %v1696_v13 = vadd.f32 %v3580_v19, %v1673_v49  ;;  %v2342_v23 = vpop.f32.mrb[68].mxu0  ;;  %v2354_v28 = vpop.f32.mrb[68].mxu1 }
 0x1ac   : > { %1758 = vst [vmem:[%s2847_s24 + $0x8] sm:$0xff] %v1742_v25  ;;  %v1750_v9 = vsel %vm1718_vm1, %v1702_v60, %v1734_v41  ;;  %v1741_v43 = vsel %vm1709_vm2, %v1693_v18, %v1725_v38  ;;  %v1681_v30 = vmul.f32 %v3574_v15, %v1640_v33  ;;  %v1672_v52 = vmul.f32 %v3574_v15, %v1595_v16  ;;  %v1604_v37 = vpop.f32.mrb[69].mxu0  ;;  %v1644_v54 = vpop.f32.mrb[69].mxu1 }
 0x1ad   : > { %1766 = vst [vmem:[%s2847_s24 + $0x48] sm:$0xff] %v1750_v9  ;;  %1757 = vst [vmem:[%s2847_s24] sm:$0xff] %v1741_v43  ;;  %v1749_v55 = vsel %vm1717_vm3, %v1701_v40, %v1733_v14  ;;  %vm1712_vm4 = vcmp.gt.f32.partialorder %v1696_v13, 0.0  ;;  %v1728_v20 = vmul.f32 0.1, %v1696_v13  ;;  %v1635_v56 = vadd.f32 %v1634_v61, %v3558_v32 }
 0x1ae   : > { %1765 = vst [vmem:[%s2847_s24 + $0x40] sm:$0xff] %v1749_v55  ;;  %v1704_v57 = vadd.f32 %v3580_v19, %v1681_v30  ;;  %v1695_v44 = vadd.f32 %v3580_v19, %v1672_v52  ;;  %v1610_v48 = vadd.f32 %v2342_v23, %v3547_v45  ;;  %v1650_v59 = vadd.f32 %v2354_v28, %v3565_v58  ;;  %v2345_v31 = vpop.f32.mrb[70].mxu0 }
 0x1af   : > { %v1744_v47 = vsel %vm1712_vm4, %v1696_v13, %v1728_v20  ;;  %v1680_v2 = vmul.f32 %v3574_v15, %v1635_v56  ;;  %v1605_v3 = vadd.f32 %v1604_v37, %v3544_v62  ;;  %v1645_v5 = vadd.f32 %v1644_v54, %v3562_v53  ;;  %v2357_v42 = vpop.f32.mrb[70].mxu1  ;;  %v1614_v32 = vpop.f32.mrb[71].mxu0 }
 0x1b0   : > { %1760 = vst [vmem:[%s2847_s24 + $0x18] sm:$0xff] %v1744_v47  ;;  %vm1720_vm5 = vcmp.gt.f32.partialorder %v1704_v57, 0.0  ;;  %v1736_v7 = vmul.f32 0.1, %v1704_v57  ;;  %vm1711_vm6 = vcmp.gt.f32.partialorder %v1695_v44, 0.0  ;;  %v1675_v58 = vmul.f32 %v3574_v15, %v1610_v48  ;;  %v1654_v62 = vpop.f32.mrb[71].mxu1 }
 0x1b1   : > { %v1727_v46 = vmul.f32 0.1, %v1695_v44  ;;  %v1703_v45 = vadd.f32 %v3580_v19, %v1680_v2  ;;  %v1683_v10 = vmul.f32 %v3574_v15, %v1650_v59  ;;  %v1674_v1 = vmul.f32 %v3574_v15, %v1605_v3 }
 0x1b2   : > { %v1752_v17 = vsel %vm1720_vm5, %v1704_v57, %v1736_v7  ;;  %v1682_v63 = vmul.f32 %v3574_v15, %v1645_v5  ;;  %v1620_v51 = vadd.f32 %v2345_v31, %v3553_v4  ;;  %v1698_v22 = vadd.f32 %v3580_v19, %v1675_v58 }
 0x1b3   : > { %v1743_v53 = vsel %vm1711_vm6, %v1695_v44, %v1727_v46  ;;  %1768 = vst [vmem:[%s2847_s24 + $0x58] sm:$0xff] %v1752_v17  ;;  %vm1719_vm7 = vcmp.gt.f32.partialorder %v1703_v45, 0.0  ;;  %v1735_v21 = vmul.f32 0.1, %v1703_v45  ;;  %v1706_v24 = vadd.f32 %v3580_v19, %v1683_v10 }
 0x1b4   : > { %1759 = vst [vmem:[%s2847_s24 + $0x10] sm:$0xff] %v1743_v53  ;;  %v1697_v8 = vadd.f32 %v3580_v19, %v1674_v1  ;;  %v1705_v29 = vadd.f32 %v3580_v19, %v1682_v63  ;;  %v1677_v11 = vmul.f32 %v3574_v15, %v1620_v51  ;;  %v1660_v34 = vadd.f32 %v2357_v42, %v3583_v50 }
 0x1b5   : > { %v1751_v4 = vsel %vm1719_vm7, %v1703_v45, %v1735_v21  ;;  %vm1714_vm8 = vcmp.gt.f32.partialorder %v1698_v22, 0.0  ;;  %v1730_v35 = vmul.f32 0.1, %v1698_v22  ;;  %vm1722_vm9 = vcmp.gt.f32.partialorder %v1706_v24, 0.0 }
 0x1b6   : > { %1767 = vst [vmem:[%s2847_s24 + $0x50] sm:$0xff] %v1751_v4  ;;  %v1738_v12 = vmul.f32 0.1, %v1706_v24  ;;  %vm1713_vm10 = vcmp.gt.f32.partialorder %v1697_v8, 0.0  ;;  %v1729_v36 = vmul.f32 0.1, %v1697_v8  ;;  %v1700_v60 = vadd.f32 %v3580_v19, %v1677_v11 }
 0x1b7   : > { %vm1721_vm11 = vcmp.gt.f32.partialorder %v1705_v29, 0.0  ;;  %v1746_v26 = vsel %vm1714_vm8, %v1698_v22, %v1730_v35  ;;  %v1737_v39 = vmul.f32 0.1, %v1705_v29  ;;  %v1685_v50 = vmul.f32 %v3574_v15, %v1660_v34 }
 0x1b8   : > { %1762 = vst [vmem:[%s2847_s24 + $0x28] sm:$0xff] %v1746_v26  ;;  %v1754_v18 = vsel %vm1722_vm9, %v1706_v24, %v1738_v12  ;;  %v1745_v33 = vsel %vm1713_vm10, %v1697_v8, %v1729_v36  ;;  %v1615_v16 = vadd.f32 %v1614_v32, %v3550_v27  ;;  %v1655_v61 = vadd.f32 %v1654_v62, %v3568_v6 }
 0x1b9   : > { %1770 = vst [vmem:[%s2847_s24 + $0x68] sm:$0xff] %v1754_v18  ;;  %1761 = vst [vmem:[%s2847_s24 + $0x20] sm:$0xff] %v1745_v33  ;;  %v1753_v0 = vsel %vm1721_vm11, %v1705_v29, %v1737_v39  ;;  %vm1716_vm12 = vcmp.gt.f32.partialorder %v1700_v60, 0.0  ;;  %v1732_v40 = vmul.f32 0.1, %v1700_v60  ;;  %v1708_v49 = vadd.f32 %v3580_v19, %v1685_v50 }
 0x1ba   : > { %1769 = vst [vmem:[%s2847_s24 + $0x60] sm:$0xff] %v1753_v0  ;;  %v1676_v41 = vmul.f32 %v3574_v15, %v1615_v16  ;;  %v1684_v38 = vmul.f32 %v3574_v15, %v1655_v61 }
 0x1bb   : > { %v1748_v25 = vsel %vm1716_vm12, %v1700_v60, %v1732_v40  ;;  %vm1724_vm13 = vcmp.gt.f32.partialorder %v1708_v49, 0.0  ;;  %v1740_v27 = vmul.f32 0.1, %v1708_v49 }
 0x1bc   : > { %1764 = vst [vmem:[%s2847_s24 + $0x38] sm:$0xff] %v1748_v25  ;;  %v1699_v6 = vadd.f32 %v3580_v19, %v1676_v41  ;;  %v1707_v14 = vadd.f32 %v3580_v19, %v1684_v38 }
 0x1bd   : > { %v1756_v13 = vsel %vm1724_vm13, %v1708_v49, %v1740_v27 }
 0x1be   : > { %1772 = vst [vmem:[%s2847_s24 + $0x78] sm:$0xff] %v1756_v13  ;;  %vm1715_vm14 = vcmp.gt.f32.partialorder %v1699_v6, 0.0  ;;  %v1731_v23 = vmul.f32 0.1, %v1699_v6  ;;  %vm1723_vm15 = vcmp.gt.f32.partialorder %v1707_v14, 0.0 }
 0x1bf   : > { %v1739_v15 = vmul.f32 0.1, %v1707_v14 }
 0x1c0   : > { %v1747_v28 = vsel %vm1715_vm14, %v1699_v6, %v1731_v23 }
 0x1c1   : > { %v1755_v9 = vsel %vm1723_vm15, %v1707_v14, %v1739_v15  ;;  %1763 = vst [vmem:[%s2847_s24 + $0x30] sm:$0xff] %v1747_v28 }
 0x1c2   : > { %1771 = vst [vmem:[%s2847_s24 + $0x70] sm:$0xff] %v1755_v9 }
 0x1c3   : > { %2620 = shalt.err (!%p2617_p5)
}
 0x1c4   : > { %s2621_s24 = scalar_lea.hbm %s3648_s5, 2048  ;;  %s2625_s18 = scalar_lea.hbm %s3712_s4, 8192 }
 0x1c5   : > { %p2622_p6 = scmp.ne.s32.totalorder %s3648_s5, %s2621_s24  ;;  %p2626_p10 = scmp.lt.u32.totalorder %s3648_s5, %s3712_s4 }
 0x1c6   : > { %p2627_p11 = scmp.lt.u32.totalorder %s2625_s18, %s2621_s24  ;;  %p2629_p13 = scmp.lt.u32.totalorder %s2621_s24, %s3648_s5 }
 0x1c7   : > { %p2623_p7 = pnand %p2622_p6, %p2784_p3 }
 0x1c8   : > { %p2628_p12 = por %p2627_p11, %p2626_p10 }
 0x1c9   : > { %p2624_p9 = pneg %p2623_p7 }
 0x1ca   : > { %p2630_p0 = por %p2629_p13, %p2628_p12 }
 0x1cc   : > { %p2631_p1 = pnand %p2630_p0, %p2624_p9 }
 0x1ce   : > { %2634 = shalt.err (!%p2631_p1)
}
 0x1cf   : > { %s2706_s30 = smov 128   ;;  %s2707_s6 = smov 8  }
 0x1d0   : > { %2534 = dma.vmem_to_hbm [thread:$0]  (%p2784_p3), %s3650_s8, 2048, %s3648_s5, %s3656_s9, %s2706_s30, %s2706_s30, %s2707_s6  }
 0x1d1 PF: > { %p2540_p2 = scmp.ge.s32.totalorder %s2703_s22, 2  ;;  %s1805_s11 = sand.u32 1, %s2675_s15  }
 0x1d2   : > { %s1806_s12 = scalar_lea.sflag [#allocation6], %s1805_s11 }
 0x1d3   : > { %p2537_p4 = pnand %p2540_p2, %p2793_p8 }
 0x1d5   : > { %2670 = dma.done.wait (!%p2537_p4), %s1806_s12, 2048  }
 0x1d6   : > { %2672 = vsyncadd (!%p2537_p4), %s1806_s12, 4294965248  ;;  %s17_s22 = sadd.s32 1, %s2703_s22   ;;  %s3717_s15 = smov %s2679_s16 }
 0x1d7   : > { %p14_p5 = scmp.ge.s32.totalorder %s17_s22, 6   ;;  %s3718_s16 = smov %s2683_s17 }
 0x1d8   : > { %s3719_s17 = smov %s2802_s7  ;;  %s3720_s18 = smov %s2695_s20 }
 0x1d9   : > { %s3721_s19 = smov %s2699_s21  ;;  %s3722_s20 = smov %s3725_s25 }
 0x1da   : > { %s3723_s21 = smov %s3729_s26  ;;  %16 = sbr.rel (!%p14_p5) target bundleno = 5 (0x5), region = 131 }
 0x1e1   :  { %1811 = vsyncpa [#allocation6], 1 }
 0x1e2   :  { %1813 = vsyncpa [#allocation6 + $0x1], 1 }
 0x1e3   :  { %1814 = vsyncmov [#allocation4] }
 0x1e6   :  { %s1815_s28 = vpop.sfrf %1814 }
 0x1e7   :  { %p1949_p3 = scmp.ne.s32.totalorder %s1815_s28, 0 }
 0x1e9   :  { %1819 = shalt.err (%p1949_p3)  }

</bundles_post_ra>
